<compile_context>
chip_gen: v7x
topology: tpu7x:2x2x1
jax: 0.10.0
libtpu: 0.0.40
codegen_flags: <defaults>
</compile_context>

<pallas_src>
import numpy as np
import jax
import jax.numpy as jnp
from jax import lax
from jax.experimental import pallas as pl
from jax.experimental.pallas import tpu as pltpu


# ----------------------------------------------------------------------------
# Bilinear interpolation weights (PyTorch align_corners=False semantics)
# ----------------------------------------------------------------------------
def make_bilinear_matrix(in_size: int, out_size: int) -> np.ndarray:
    """W of shape (out_size, in_size) s.t. out = W @ in (1-D bilinear), float64."""
    scale = in_size / out_size
    i = np.arange(out_size, dtype=np.float64)
    src = (i + 0.5) * scale - 0.5
    src = np.maximum(src, 0.0)                       # PyTorch clamps negative src to 0
    i0 = np.minimum(np.floor(src).astype(np.int64), in_size - 1)
    i1 = np.minimum(i0 + 1, in_size - 1)
    frac = src - i0
    W = np.zeros((out_size, in_size), dtype=np.float64)
    W[np.arange(out_size), i0] += 1.0 - frac
    W[np.arange(out_size), i1] += frac
    return W


def make_bilinear_kron(in_h: int, in_w: int, out_h: int, out_w: int) -> np.ndarray:
    """Combined 2-D bilinear resize matrix K of shape (in_h*in_w, out_h*out_w):
       out[p, s*out_w + t] = sum_{h,w} x[p, h*in_w + w] * K[h*in_w + w, s*out_w + t]."""
    Wy = make_bilinear_matrix(in_h, out_h)           # (out_h, in_h)
    Wx = make_bilinear_matrix(in_w, out_w)           # (out_w, in_w)
    return np.kron(Wy, Wx).T.astype(np.float32)      # (in_h*in_w, out_h*out_w)


def _check_kron_construction():
    """Numpy f64 sanity check: kron-matmul resize == separable bilinear resize."""
    rng = np.random.default_rng(0)
    P, H, W, S, T = 3, 5, 7, 11, 6
    x = rng.standard_normal((P, H, W))
    Wy = make_bilinear_matrix(H, S)
    Wx = make_bilinear_matrix(W, T)
    ref = np.einsum("sh,phw,tw->pst", Wy, x, Wx)
    got = (x.reshape(P, H * W) @ np.kron(Wy, Wx).T.astype(np.float64)).reshape(P, S, T)
    assert np.allclose(ref, got, atol=1e-10), "kron bilinear construction mismatch"


# ----------------------------------------------------------------------------
# Pallas kernels
# ----------------------------------------------------------------------------
def resize_kernel(x_ref, k_ref, o_ref):
    # x_ref: (TILE_P, H*W) bf16, k_ref: (H*W, S*T) bf16, o_ref: (TILE_P, S*T)
    o_ref[...] = jnp.dot(
        x_ref[...], k_ref[...], preferred_element_type=jnp.float32
    ).astype(o_ref.dtype)


def encdec_kernel(p_ref, w1_ref, b1_ref, w2t_ref, b2_ref, o_ref):
    # p_ref:  (TILE_N, Cpp) bf16   patches
    # w1_ref: (Cpp, E)      bf16   patch-embed conv (stride == kernel)
    # b1_ref: (1, E)        f32
    # w2t_ref:(K, E)        bf16   1x1-conv decoder, pre-transposed
    # b2_ref: (K, 1)        f32
    # o_ref:  (K, TILE_N)   f32    logits, transposed for a lane-dense store
    h = jnp.dot(p_ref[...], w1_ref[...], preferred_element_type=jnp.float32)
    h = jnp.maximum(h + b1_ref[...], 0.0)                       # f32 elementwise (v5e-safe)
    logits_t = lax.dot_general(
        w2t_ref[...], h.astype(jnp.bfloat16),
        dimension_numbers=(((1,), (1,)), ((), ())),             # contract over E (NT matmul)
        preferred_element_type=jnp.float32,
    )
    o_ref[...] = logits_t + b2_ref[...]


# ----------------------------------------------------------------------------
# Wrappers
# ----------------------------------------------------------------------------
def bilinear_resize_nchw(x, out_size, *, out_dtype=jnp.float32):
    """x: (B, C, H, W) -> (B, C, out_size, out_size), align_corners=False."""
    B, C, H, W = x.shape
    P, HW, ST = B * C, H * W, out_size * out_size

    kron = jnp.asarray(make_bilinear_kron(H, W, out_size, out_size), jnp.bfloat16)
    xflat = x.reshape(P, HW).astype(jnp.bfloat16)

    tile_p = 8 if P % 8 == 0 else P
    flops = 2 * P * HW * ST
    bytes_accessed = P * HW * 2 + HW * ST * 2 + P * ST * jnp.dtype(out_dtype).itemsize

    out = pl.pallas_call(
        resize_kernel,
        out_shape=jax.ShapeDtypeStruct((P, ST), out_dtype),
        grid=(P // tile_p,),
        in_specs=[
            pl.BlockSpec((tile_p, HW), lambda i: (i, 0)),
            pl.BlockSpec((HW, ST), lambda i: (0, 0)),       # resize matrix stays resident
        ],
        out_specs=pl.BlockSpec((tile_p, ST), lambda i: (i, 0)),
        compiler_params=pltpu.CompilerParams(
            dimension_semantics=("parallel",),
            vmem_limit_bytes=32 * 1024 * 1024,
        ),
        cost_estimate=pl.CostEstimate(
            flops=flops, transcendentals=0, bytes_accessed=bytes_accessed
        ),
    )(xflat, kron)
    return out.reshape(B, C, out_size, out_size)


def extract_patches_nchw(x, patch):
    """(B, C, S, S) -> (B*Hp*Wp, C*patch*patch); row order matches Conv2d weight flatten."""
    # TODO(synk): fold this im2col into the encoder pallas_call via a (b, hp, wp) BlockSpec
    # over an NHWC-resident resize output to avoid the extra HBM round trip at real SAM scale.
    B, C, S, _ = x.shape
    Hp = S // patch
    x = x.reshape(B, C, Hp, patch, Hp, patch)
    x = jnp.transpose(x, (0, 2, 4, 1, 3, 5))        # (B, Hp, Wp, C, p, p)
    return x.reshape(B * Hp * Hp, C * patch * patch)


def encoder_decoder(patches, w1, b1, w2t, b2):
    """Fused patch-embed conv + ReLU + 1x1-conv decoder.

    patches: (N, Cpp) bf16; w1: (Cpp, E) bf16; b1: (1, E) f32;
    w2t: (K, E) bf16; b2: (K, 1) f32.  Returns logits transposed: (K, N) f32.
    """
    N, Cpp = patches.shape
    E = w1.shape[1]
    K = w2t.shape[0]

    tile_n = 128 if N % 128 == 0 else N             # output lane dim stays >= 128 / full
    flops = 2 * N * Cpp * E + 2 * N * E * K
    bytes_accessed = N * Cpp * 2 + Cpp * E * 2 + E * 4 + K * E * 2 + K * 4 + K * N * 4

    return pl.pallas_call(
        encdec_kernel,
        out_shape=jax.ShapeDtypeStruct((K, N), jnp.float32),
        grid=(N // tile_n,),
        in_specs=[
            pl.BlockSpec((tile_n, Cpp), lambda i: (i, 0)),
            pl.BlockSpec((Cpp, E), lambda i: (0, 0)),   # weights resident across steps
            pl.BlockSpec((1, E), lambda i: (0, 0)),
            pl.BlockSpec((K, E), lambda i: (0, 0)),
            pl.BlockSpec((K, 1), lambda i: (0, 0)),
        ],
        out_specs=pl.BlockSpec((K, tile_n), lambda i: (0, i)),
        compiler_params=pltpu.CompilerParams(
            dimension_semantics=("parallel",),          # shardable across TCs on v7x
            vmem_limit_bytes=32 * 1024 * 1024,
        ),
        cost_estimate=pl.CostEstimate(
            flops=flops, transcendentals=0, bytes_accessed=bytes_accessed
        ),
    )(patches, w1, b1, w2t, b2)


def sam_feat_seg_forward(x, params, *, encoder_img_size, patch):
    """Pallas implementation of SamFeatSeg.forward.  x: (B, C, H, W) float32 NCHW."""
    B, C, H, W = x.shape
    original_size = x.shape[-1]

    # 1) resize to encoder input resolution (bilinear, align_corners=False)
    x_rs = bilinear_resize_nchw(x, encoder_img_size, out_dtype=jnp.bfloat16)

    # 2)+3) image_encoder (patch-embed conv + ReLU) fused with seg_decoder (1x1 conv)
    patches = extract_patches_nchw(x_rs, patch)                        # (N, Cpp) bf16
    logits_t = encoder_decoder(patches, params["w1"], params["b1"],
                               params["w2t"], params["b2"])            # (K, N) f32
    Hp = encoder_img_size // patch
    K = params["w2t"].shape[0]
    out = logits_t.reshape(K, B, Hp, Hp).transpose(1, 0, 2, 3)         # (B, K, Hp, Hp)

    # 4) resize back to the original spatial size if needed
    if out.shape[-1] != original_size:
        out = bilinear_resize_nchw(out, original_size, out_dtype=jnp.float32)
    return out
    # TODO(synk): get_embedding() (adaptive_avg_pool2d of the encoder output) not implemented.


# ----------------------------------------------------------------------------
# References for correctness checks
# ----------------------------------------------------------------------------
def reference_forward_bf16(x, params, *, encoder_img_size, patch):
    """Same math / same bf16 quantization as the Pallas path, in pure JAX (tight check)."""
    B, C, H, W = x.shape
    original_size = W
    K = params["w2t"].shape[0]
    Hp = encoder_img_size // patch

    def kron_resize(t, out_size, out_dtype):
        b, c, h, w = t.shape
        kr = jnp.asarray(make_bilinear_kron(h, w, out_size, out_size),
                         jnp.bfloat16).astype(jnp.float32)
        tf = t.reshape(b * c, h * w).astype(jnp.bfloat16).astype(jnp.float32)
        return (tf @ kr).astype(out_dtype).reshape(b, c, out_size, out_size)

    x_rs = kron_resize(x, encoder_img_size, jnp.bfloat16)
    patches = extract_patches_nchw(x_rs, patch).astype(jnp.float32)
    w1 = params["w1"].astype(jnp.float32)
    w2t = params["w2t"].astype(jnp.float32)
    h = jnp.maximum(patches @ w1 + params["b1"], 0.0)
    logits = h.astype(jnp.bfloat16).astype(jnp.float32) @ w2t.T + params["b2"].reshape(1, -1)
    out = logits.reshape(B, Hp, Hp, K).transpose(0, 3, 1, 2)
    if out.shape[-1] != original_size:
        out = kron_resize(out, original_size, jnp.float32)
    return out


def reference_forward_fp32(x, w1_f32, b1, w2t_f32, b2, *, encoder_img_size, patch):
    """Full-precision math reference (separable bilinear, f32 matmuls); loose check."""
    B, C, H, W = x.shape
    original_size = W
    Wy = jnp.asarray(make_bilinear_matrix(H, encoder_img_size), jnp.float32)
    Wx = jnp.asarray(make_bilinear_matrix(W, encoder_img_size), jnp.float32)
    x_rs = jnp.einsum("sh,bchw,tw->bcst", Wy, x, Wx)
    patches = extract_patches_nchw(x_rs, patch)
    h = jnp.maximum(patches @ w1_f32 + b1, 0.0)
    logits = h @ w2t_f32.T + b2.reshape(1, -1)
    Hp = encoder_img_size // patch
    K = w2t_f32.shape[0]
    out = logits.reshape(B, Hp, Hp, K).transpose(0, 3, 1, 2)
    if out.shape[-1] != original_size:
        Wy2 = jnp.asarray(make_bilinear_matrix(Hp, original_size), jnp.float32)
        out = jnp.einsum("sh,bchw,tw->bcst", Wy2, out, Wy2)
    return out


# ----------------------------------------------------------------------------
if __name__ == "__main__":
    _check_kron_construction()

    # Small shapes consistent with the module's forward (encoder hyper-params chosen so
    # the final resize branch executes and the encdec grid has >= 2 parallel steps).
    B, C = 4, 4
    original_size = 16            # input spatial size (H = W)
    encoder_img_size = 64         # image_encoder.img_size
    patch = 8                     # patch-embed stride/kernel  -> Hp = 8 != 16 -> resize back
    embed_dim = 128               # encoder embedding dim
    num_classes = 4               # decoder output channels

    key = jax.random.PRNGKey(0)
    kx, k1, k2, k3, k4 = jax.random.split(key, 5)

    x = jax.random.normal(kx, (B, C, original_size, original_size), dtype=jnp.float32)

    # PyTorch conv weight layouts, flattened.
    # Encoder patch-embed conv weight: (E, C, p, p) -> (C*p*p, E)
    w1_conv = 0.05 * jax.random.normal(k1, (embed_dim, C, patch, patch), dtype=jnp.float32)
    w1_f32 = w1_conv.reshape(embed_dim, C * patch * patch).T
    b1 = (0.01 * jax.random.normal(k2, (embed_dim,), dtype=jnp.float32)).reshape(1, embed_dim)
    # Decoder 1x1 conv weight: (K, E, 1, 1) -> kept as (K, E) (already "transposed")
    w2_conv = 0.05 * jax.random.normal(k3, (num_classes, embed_dim, 1, 1), dtype=jnp.float32)
    w2t_f32 = w2_conv.reshape(num_classes, embed_dim)
    b2 = (0.01 * jax.random.normal(k4, (num_classes,), dtype=jnp.float32)).reshape(num_classes, 1)

    params = {
        "w1": w1_f32.astype(jnp.bfloat16),   # MXU operands in bf16, f32 accumulate
        "b1": b1,                            # biases stay f32
        "w2t": w2t_f32.astype(jnp.bfloat16),
        "b2": b2,
    }

    out = sam_feat_seg_forward(x, params, encoder_img_size=encoder_img_size, patch=patch)
    out = jax.block_until_ready(out)
    assert out.shape == (B, num_classes, original_size, original_size), out.shape

    # Tight check: identical math & quantization, pure JAX.
    ref_q = reference_forward_bf16(x, params, encoder_img_size=encoder_img_size, patch=patch)
    ref_q = jax.block_until_ready(ref_q)
    err_q = float(jnp.max(jnp.abs(out - ref_q)))
    assert jnp.allclose(out, ref_q, atol=5e-3, rtol=5e-3), f"bf16-ref mismatch, max abs {err_q}"

    # Loose check: full-precision f32 math reference (bf16-vs-f32 tolerance).
    ref_f = reference_forward_fp32(x, w1_f32, b1, w2t_f32, b2,
                                   encoder_img_size=encoder_img_size, patch=patch)
    ref_f = jax.block_until_ready(ref_f)
    err_f = float(jnp.max(jnp.abs(out - ref_f)))
    assert jnp.allclose(out, ref_f, atol=5e-2, rtol=5e-2), f"f32-ref mismatch, max abs {err_f}"

    print("KERNEL_OK")
</pallas_src>

<mosaic_0001>
module attributes {stable_mosaic.version = 11 : i64} {
  func.func @resize_kernel(%arg0: i32, %arg1: memref<8x256xbf16, #tpu.memory_space<vmem>>, %arg2: memref<256x4096xbf16, #tpu.memory_space<vmem>>, %arg3: memref<8x4096xbf16, #tpu.memory_space<vmem>>) attributes {dimension_semantics = [#tpu.dimension_semantics<parallel>], iteration_bounds = array<i64: 2>, scalar_prefetch = 0 : i64, scratch_operands = 0 : i64, tpu.core_type = #tpu.core_type<tc>, window_params = [{transform_indices = @transform_0, window_bounds = array<i64: 8, 256>}, {pipeline_mode = #tpu.pipeline_mode<synchronous>, transform_indices = @transform_1, window_bounds = array<i64: 256, 4096>}, {transform_indices = @transform_2, window_bounds = array<i64: 8, 4096>}]} {
    %c0 = arith.constant 0 : index
    %c0_0 = arith.constant 0 : index
    %0 = vector.load %arg1[%c0, %c0_0] : memref<8x256xbf16, #tpu.memory_space<vmem>>, vector<8x256xbf16>
    %c0_1 = arith.constant 0 : index
    %c0_2 = arith.constant 0 : index
    %1 = vector.load %arg2[%c0_1, %c0_2] : memref<256x4096xbf16, #tpu.memory_space<vmem>>, vector<256x4096xbf16>
    %cst = arith.constant dense<0.000000e+00> : vector<8x4096xf32>
    %2 = tpu.matmul %0, %1, %cst {dimension_numbers = #tpu.dot_dimension_numbers<[1], [0], [0], [1], [0, 0, 1, 1], [], []>} : vector<8x256xbf16>, vector<256x4096xbf16>, vector<8x4096xf32> -> vector<8x4096xf32>
    %3 = arith.truncf %2 : vector<8x4096xf32> to vector<8x4096xbf16>
    %c0_3 = arith.constant 0 : index
    %c0_4 = arith.constant 0 : index
    %4 = vector.load %arg3[%c0_3, %c0_4] : memref<8x4096xbf16, #tpu.memory_space<vmem>>, vector<8x4096xbf16>
    tpu.vector_store %arg3[%c0_3, %c0_4], %3 {strides = array<i32>} : memref<8x4096xbf16, #tpu.memory_space<vmem>>, vector<8x4096xbf16>,
    return
  }
  func.func @transform_0(%arg0: i32) -> (i32, i32) {
    %c0_i32 = arith.constant 0 : i32
    %c0_i32_0 = arith.constant 0 : i32
    return %arg0, %c0_i32 : i32, i32
  }
  func.func @transform_1(%arg0: i32) -> (i32, i32) {
    %c0_i32 = arith.constant 0 : i32
    %c0_i32_0 = arith.constant 0 : i32
    %c0_i32_1 = arith.constant 0 : i32
    return %c0_i32, %c0_i32_0 : i32, i32
  }
  func.func @transform_2(%arg0: i32) -> (i32, i32) {
    %c0_i32 = arith.constant 0 : i32
    %c0_i32_0 = arith.constant 0 : i32
    return %arg0, %c0_i32 : i32, i32
  }
}

</mosaic_0001>

<bundles_post_ra>
// kernel: tpu_custom_call.1
= control target key start
LH: loop header
LB: loop body
LE: loop exit
PB: predicated region body
PF: predicated region fallthrough
CT: control target
= control target key end

     0   :  { %7 = vsyncpa [#allocation3], 0  ;;  %s5186_s0 = inlined_call_operand.hbm [shape: bf16[16,256], index: 0, kind: input, shape index: {}]   ;;  %s5187_s1 = inlined_call_operand.hbm [shape: bf16[256,4096], index: 1, kind: input, shape index: {}]   ;;  %s5188_s2 = inlined_call_operand.hbm [shape: bf16[16,4096], index: 2, kind: output, shape index: {}]  }
   0x1   :  { %9 = vsyncpa [#allocation3 + $0x1], 0 }
   0x2   :  { %10 = vsyncpa [#allocation6], 0 }
   0x3   :  { %11 = vsyncpa [#allocation4], 0 }
   0x4   :  { %13 = vsyncpa [#allocation4 + $0x1], 0  ;;  %s4925_s9 = smov 0   ;;  %s4927_s10 = smov 0  }
   0x5   :  { %s4929_s11 = smov 0   ;;  %s4931_s12 = smov 0  }
   0x6 LB: > { %s4946_s13 = sadd.s32 4294967295, %s4903_s12   ;;  %s4150_s14 = sadd.s32 4294967294, %s4903_s12   ;;  %s4903_s12 = sphi %s4931_s12, %s5208_s12   ;;  %s4899_s11 = sphi %s4929_s11, %s5207_s11   ;;  %s4895_s10 = sphi %s4927_s10, %s5206_s10   ;;  %s4891_s9 = sphi %s4925_s9, %s5205_s9  }
   0x7   : > { %p39_p0 = scmp.ne.s32.totalorder %s4895_s10, %s4891_s9  ;;  %p5189_p1 = scmp.eq.s32.totalorder %s4946_s13, 0 }
   0x8   : > { %p90_p3 = scmp.eq.s32.totalorder %s4150_s14, 1  ;;  %p4151_p5 = scmp.ge.s32.totalorder %s4903_s12, 1 }
   0x9   : > { %p4955_p4 = por %p5189_p1, %p39_p0  ;;  %p97_p7 = scmp.lt.s32.totalorder %s4903_s12, 3 }
   0xa   : > { %p4960_p6 = por %p90_p3, %p39_p0  ;;  %s4905_s18 = smov [#allocation5]  }
   0xb   : > { %s5192_s15 = scalar_select %p4955_p4, 1, 0 }
   0xc   : > { %s5193_s16 = scalar_select %p4960_p6, 1, 0 }
   0xd   : > { %p4965_p8 = pnand %p4151_p5, %p97_p7  ;;  %s109_s19 = sshll.u32 %s4905_s18, 4  ;;  %s4969_s19 = int_to_ptr.vmem [resolvable:$true] %s109_s19 }
   0xe   : > { %s4981_s21 = sadd.s32 1, %s4903_s12   ;;  %s26_s22 = sadd.s32 1, %s4899_s11 }
   0xf   : > { %s5194_s17 = scalar_select %p4965_p8, 1, 0 }
  0x10   : > { %p4722_p9 = pneg %p4965_p8  ;;  %s23_s23 = ssub.s32 %s4903_s12, %s4981_s21 }
  0x11   : > { %s4775_s26 = scalar_lea.hbm %s5187_s1, 65536 }
  0x12   : > { %p4976_p11 = pnand %p4722_p9, %p5189_p1  ;;  %p4776_p12 = scmp.ne.s32.totalorder %s5187_s1, %s4775_s26 }
  0x13   : > { %p4782_p5 = scmp.lt.u32.totalorder %s4775_s26, %s5187_s1 }
  0x14   : > { %p4777_p13 = pneg %p4976_p11 }
  0x16   : > { %p4778_p0 = pnand %p4777_p13, %p4776_p12 }
  0x18   : > { %p4779_p3 = pneg %p4778_p0 }
  0x1a   : > { %p4784_p7 = pnand %p4782_p5, %p4779_p3 }
  0x1c   : > { %4787 = shalt.err (!%p4784_p7)
}
  0x1d   : > { %s4788_s3 = scalar_lea.vmem %s4969_s19, 65536  ;;  %p4796_p2 = scmp.lt.s32.totalorder %s4969_s19, %s4969_s19 }
  0x1e   : > { %p4789_p9 = scmp.ne.s32.totalorder %s4969_s19, %s4788_s3  ;;  %p4797_p6 = scmp.lt.s32.totalorder %s4788_s3, %s4788_s3 }
  0x20   : > { %p4791_p10 = pnand %p4789_p9, %p4777_p13  ;;  %p4798_p4 = por %p4797_p6, %p4796_p2 }
  0x22   : > { %p4792_p1 = pneg %p4791_p10 }
  0x24   : > { %p4799_p8 = pnand %p4798_p4, %p4792_p1 }
  0x26   : > { %4802 = shalt.err (!%p4799_p8)
}
  0x27   : > { %s4906_s4 = smov 2048   ;;  %s4907_s5 = smov 128  }
  0x28   : > { %4725 = dma.hbm_to_vmem [thread:$0]  (!%p4976_p11), %s5187_s1, 65536, %s4969_s19, [#allocation6], %s4906_s4, %s4906_s4, %s4907_s5  }
  0x29   : > { %p24_p2 = scmp.eq.s32.totalorder %s23_s23, 0  ;;  %p33_p1 = scmp.ne.s32.totalorder %s4899_s11, %s4895_s10 }
  0x2a   : > { %p34_p4 = scmp.eq.s32.totalorder %s4903_s12, 0  ;;  %p4735_p6 = scmp.lt.s32.totalorder %s4903_s12, 2 }
  0x2b   : > { %s5012_s8 = scalar_select %p24_p2, %s4899_s11, %s26_s22  }
  0x2c   : > { %p35_p8 = por %p34_p4, %p33_p1  ;;  %p5196_p10 = scmp.eq.s32.totalorder %s4946_s13, 1 }
  0x2d   : > { %s123_s18 = sand.u32 1, %s4899_s11   ;;  %s4696_s24 = sshll.u32 %s4903_s12, 7 }
  0x2e   : > { %p5016_p12 = por %p5196_p10, %p33_p1  ;;  %s4154_s25 = sshll.u32 %s123_s18, 3 }
  0x2f   : > { %s5025_s27 = scalar_lea.hbm %s5186_s0, %s4696_s24  ;;  %s127_s19 = scalar_lea.vmem [#allocation2], %s4154_s25 }
  0x30   : > { %s135_s22 = sshll.u32 %s127_s19, 4  ;;  %p5027_p11 = pnand %p4735_p6, %p35_p8  ;;  %s5031_s22 = int_to_ptr.vmem [resolvable:$true] %s135_s22 }
  0x31   : > { %s124_s28 = scalar_lea.sflag [#allocation3], %s123_s18  ;;  %s4803_s29 = scalar_lea.hbm %s5025_s27, 128 }
  0x32   : > { %p4804_p13 = scmp.ne.s32.totalorder %s5025_s27, %s4803_s29  ;;  %p4805_p0 = pneg %p5027_p11 }
  0x33   : > { %s4808_s4 = scalar_lea.hbm %s5186_s0, 256  ;;  %p4809_p7 = scmp.lt.u32.totalorder %s5025_s27, %s5186_s0 }
  0x34   : > { %p4806_p3 = pnand %p4805_p0, %p4804_p13  ;;  %p4810_p9 = scmp.lt.u32.totalorder %s4808_s4, %s4803_s29 }
  0x35   : > { %p4812_p1 = scmp.lt.u32.totalorder %s4803_s29, %s5025_s27 }
  0x36   : > { %p4807_p5 = pneg %p4806_p3  ;;  %p4811_p2 = por %p4810_p9, %p4809_p7 }
  0x38   : > { %p4813_p4 = por %p4812_p1, %p4811_p2 }
  0x3a   : > { %p4814_p6 = pnand %p4813_p4, %p4807_p5 }
  0x3c   : > { %4817 = shalt.err (!%p4814_p6)
}
  0x3d   : > { %s4818_s7 = scalar_lea.vmem %s5031_s22, 128  ;;  %s4908_s18 = smov [#allocation2]  }
  0x3e   : > { %p4819_p8 = scmp.ne.s32.totalorder %s5031_s22, %s4818_s7  ;;  %s4823_s24 = sshll.u32 %s4908_s18, 4  ;;  %s4824_s24 = int_to_ptr.vmem [resolvable:$false] %s4823_s24 }
  0x3f   : > { %s4825_s25 = scalar_lea.vmem %s4824_s24, 256  ;;  %p4826_p3 = scmp.lt.s32.totalorder %s5031_s22, %s4824_s24 }
  0x40   : > { %p4821_p10 = pnand %p4819_p8, %p4805_p0  ;;  %p4827_p7 = scmp.lt.s32.totalorder %s4825_s25, %s4818_s7 }
  0x42   : > { %p4822_p13 = pneg %p4821_p10  ;;  %p4828_p9 = por %p4827_p7, %p4826_p3 }
  0x44   : > { %p4829_p2 = pnand %p4828_p9, %p4822_p13 }
  0x46   : > { %4832 = shalt.err (!%p4829_p2)
}
  0x47   : > { %4729 = dma.hbm_to_vmem [thread:$0]  (!%p5027_p11), %s5025_s27, 128, %s5031_s22, %s124_s28  }
  0x48   : > { %p5199_p5 = scmp.ne.s32.totalorder %s5194_s17, 0 }
  0x49   : > { %s5061_s20 = sand.u32 (!%p5199_p5), 1, %s4895_s10   ;;  %p5200_p0 = scmp.ne.s32.totalorder (!%p5199_p5), %s5192_s15, 0 }
  0x4a   : > { %144 = sbr.rel (%p5199_p5) target bundleno = 830 (0x33e), region = 28  ;;  %s4158_s26 = sshll.u32 (!%p5199_p5), %s5061_s20, 3 }
  0x4b   : > { %s147_s19 = scalar_lea.sflag (!%p5199_p5), [#allocation3], %s5061_s20  ;;  %s5065_s29 = scalar_lea.vmem (!%p5199_p5), [#allocation2], %s4158_s26 }
  0x51   : > { %4878 = dma.done.wait (%p5200_p0), %s147_s19, 128  }
  0x52   : > { %4880 = vsyncadd (%p5200_p0), %s147_s19, 4294967168  ;;  %p5201_p11 = scmp.eq.s32.totalorder %s4946_s13, 0 }
  0x54   : > { %4882 = dma.done.wait (%p5201_p11), [#allocation6], 65536   ;;  %p5202_p1 = pmov %p5201_p11 }
  0x55   : > { %v176_v0 = vld [vmem:[#allocation5] sm:$0xff]  ;;  %v177_v2 = vld [vmem:[#allocation5 + $0x8] sm:$0xff]  ;;  %v5076_v53 = vld [vmem:[%s5065_s29] sm:$0xff]  ;;  %s4160_s15 = sshll.u32 %s5061_s20, 7  ;;  %s4713_s27 = sshll.u32 %s4946_s13, 11 }
  0x56   : > { %4884 = vsyncadd (%p5202_p1), [#allocation6], 4294901760  ;;  %v192_v1 = vld [vmem:[#allocation5 + $0x80] sm:$0xff]  ;;  %v193_v4 = vld [vmem:[#allocation5 + $0x88] sm:$0xff]  ;;  %v5080_v57 = vcombine.high %v5076_v53, %v5076_v53  ;;  %s5105_s17 = scalar_lea.vmem [#allocation7], %s4160_s15  ;;  %s5140_s30 = scalar_lea.hbm %s5188_s2, %s4713_s27 }
  0x57   : > { %v4164_v3 = vcombine.high %v176_v0, %v192_v1  ;;  %v4163_v5 = vcombine.low %v176_v0, %v192_v1  ;;  %v208_v6 = vld [vmem:[#allocation5 + $0x100] sm:$0xff]  ;;  %v4166_v8 = vcombine.high %v177_v2, %v193_v4  ;;  %v4165_v9 = vcombine.low %v177_v2, %v193_v4  ;;  %v209_v11 = vld [vmem:[#allocation5 + $0x108] sm:$0xff]  ;;  %s4070_s22 = sshll.u32 %s5105_s17, 4  ;;  %s4056_s13 = scalar_lea.sflag [#allocation4], %s5061_s20  ;;  %s5142_s22 = int_to_ptr.vmem [resolvable:$true] %s4070_s22 }
  0x58   : > { %v224_v7 = vld [vmem:[#allocation5 + $0x180] sm:$0xff]  ;;  %v225_v12 = vld [vmem:[#allocation5 + $0x188] sm:$0xff]  ;;  %3287 = vmatprep.mubr.bf16.mxu0 %v5080_v57  ;;  %3328 = vmatprep.mubr.bf16.mxu1 %v5080_v57  ;;  %s4833_s3 = scalar_lea.vmem %s5142_s22, 2048  ;;  %s4909_s4 = smov [#allocation7]  }
  0x59   : > { %v4196_v10 = vcombine.high %v208_v6, %v224_v7  ;;  %v240_v13 = vld [vmem:[#allocation5 + $0x200] sm:$0xff]  ;;  %3255 = vmatprep.subr.bf16.mxu0 %v4164_v3  ;;  %v4198_v14 = vcombine.high %v209_v11, %v225_v12  ;;  %v241_v16 = vld [vmem:[#allocation5 + $0x208] sm:$0xff]  ;;  %3296 = vmatprep.subr.bf16.mxu1 %v4166_v8  ;;  %v4195_v18 = vcombine.low %v208_v6, %v224_v7  ;;  %p4834_p4 = scmp.ne.s32.totalorder %s5142_s22, %s4833_s3  ;;  %s4837_s5 = sshll.u32 %s4909_s4, 4  ;;  %s4838_s5 = int_to_ptr.vmem [resolvable:$false] %s4837_s5 }
  0x5a   : > { %v256_v15 = vld [vmem:[#allocation5 + $0x280] sm:$0xff]  ;;  %v257_v17 = vld [vmem:[#allocation5 + $0x288] sm:$0xff]  ;;  %3256 = vmatpush1.bf16.msra.mxu0 %v4163_v5  ;;  %3297 = vmatpush1.bf16.msra.mxu1 %v4165_v9  ;;  %v4197_v19 = vcombine.low %v209_v11, %v225_v12  ;;  %s4839_s6 = scalar_lea.vmem %s4838_s5, 4096  ;;  %p4840_p10 = scmp.lt.s32.totalorder %s5142_s22, %s4838_s5 }
  0x5b   : > { %3257 = vmatprep.subr.bf16.mxu0 %v4196_v10  ;;  %v4228_v20 = vcombine.high %v240_v13, %v256_v15  ;;  %3298 = vmatprep.subr.bf16.mxu1 %v4198_v14  ;;  %v4230_v21 = vcombine.high %v241_v16, %v257_v17  ;;  %v272_v22 = vld [vmem:[#allocation5 + $0x300] sm:$0xff]  ;;  %v273_v24 = vld [vmem:[#allocation5 + $0x308] sm:$0xff]  ;;  %v4227_v26 = vcombine.low %v240_v13, %v256_v15  ;;  %p4835_p6 = pnand %p4834_p4, %p5016_p12  ;;  %p4841_p13 = scmp.lt.s32.totalorder %s4839_s6, %s4833_s3 }
  0x5c   : > { %v288_v23 = vld [vmem:[#allocation5 + $0x380] sm:$0xff]  ;;  %v289_v25 = vld [vmem:[#allocation5 + $0x388] sm:$0xff]  ;;  %v4229_v27 = vcombine.low %v241_v16, %v257_v17 }
  0x5d   : > { %v4260_v28 = vcombine.high %v272_v22, %v288_v23  ;;  %v4262_v29 = vcombine.high %v273_v24, %v289_v25  ;;  %v304_v30 = vld [vmem:[#allocation5 + $0x400] sm:$0xff]  ;;  %v305_v32 = vld [vmem:[#allocation5 + $0x408] sm:$0xff]  ;;  %v4259_v34 = vcombine.low %v272_v22, %v288_v23  ;;  %v4261_v35 = vcombine.low %v273_v24, %v289_v25  ;;  %p4836_p8 = pneg %p4835_p6  ;;  %p4842_p3 = por %p4841_p13, %p4840_p10 }
  0x5e   : > { %3258 = vmatpush1.bf16.msra.mxu0 %v4195_v18  ;;  %3299 = vmatpush1.bf16.msra.mxu1 %v4197_v19  ;;  %v320_v31 = vld [vmem:[#allocation5 + $0x480] sm:$0xff]  ;;  %v321_v33 = vld [vmem:[#allocation5 + $0x488] sm:$0xff] }
  0x5f   : > { %3259 = vmatprep.subr.bf16.mxu0 %v4228_v20  ;;  %3300 = vmatprep.subr.bf16.mxu1 %v4230_v21  ;;  %v4292_v36 = vcombine.high %v304_v30, %v320_v31  ;;  %v4294_v37 = vcombine.high %v305_v32, %v321_v33  ;;  %v336_v38 = vld [vmem:[#allocation5 + $0x500] sm:$0xff]  ;;  %v337_v40 = vld [vmem:[#allocation5 + $0x508] sm:$0xff]  ;;  %v4291_v42 = vcombine.low %v304_v30, %v320_v31  ;;  %p4843_p7 = pnand %p4842_p3, %p4836_p8 }
  0x60   : > { %v352_v39 = vld [vmem:[#allocation5 + $0x580] sm:$0xff]  ;;  %v353_v41 = vld [vmem:[#allocation5 + $0x588] sm:$0xff]  ;;  %v4293_v43 = vcombine.low %v305_v32, %v321_v33 }
  0x61   : > { %v4324_v44 = vcombine.high %v336_v38, %v352_v39  ;;  %v4326_v45 = vcombine.high %v337_v40, %v353_v41  ;;  %v368_v46 = vld [vmem:[#allocation5 + $0x600] sm:$0xff]  ;;  %v369_v48 = vld [vmem:[#allocation5 + $0x608] sm:$0xff]  ;;  %v4323_v50 = vcombine.low %v336_v38, %v352_v39  ;;  %v4325_v51 = vcombine.low %v337_v40, %v353_v41 }
  0x62   : > { %3260 = vmatpush1.bf16.msra.mxu0 %v4227_v26  ;;  %3301 = vmatpush1.bf16.msra.mxu1 %v4229_v27  ;;  %v384_v47 = vld [vmem:[#allocation5 + $0x680] sm:$0xff]  ;;  %v385_v49 = vld [vmem:[#allocation5 + $0x688] sm:$0xff] }
  0x63   : > { %3261 = vmatprep.subr.bf16.mxu0 %v4260_v28  ;;  %3302 = vmatprep.subr.bf16.mxu1 %v4262_v29  ;;  %v4356_v52 = vcombine.high %v368_v46, %v384_v47  ;;  %v4358_v54 = vcombine.high %v369_v48, %v385_v49  ;;  %v400_v55 = vld [vmem:[#allocation5 + $0x700] sm:$0xff]  ;;  %v401_v58 = vld [vmem:[#allocation5 + $0x708] sm:$0xff]  ;;  %v4355_v60 = vcombine.low %v368_v46, %v384_v47 }
  0x64   : > { %v416_v56 = vld [vmem:[#allocation5 + $0x780] sm:$0xff]  ;;  %v417_v59 = vld [vmem:[#allocation5 + $0x788] sm:$0xff]  ;;  %v4357_v61 = vcombine.low %v369_v48, %v385_v49 }
  0x65   : > { %v4388_v62 = vcombine.high %v400_v55, %v416_v56  ;;  %v4390_v63 = vcombine.high %v401_v58, %v417_v59  ;;  %v432_v0 = vld [vmem:[#allocation5 + $0x800] sm:$0xff]  ;;  %v433_v2 = vld [vmem:[#allocation5 + $0x808] sm:$0xff]  ;;  %v4387_v4 = vcombine.low %v400_v55, %v416_v56  ;;  %v4389_v5 = vcombine.low %v401_v58, %v417_v59 }
  0x66   : > { %3262 = vmatpush1.bf16.msra.mxu0 %v4259_v34  ;;  %3303 = vmatpush1.bf16.msra.mxu1 %v4261_v35  ;;  %v448_v1 = vld [vmem:[#allocation5 + $0x880] sm:$0xff]  ;;  %v449_v3 = vld [vmem:[#allocation5 + $0x888] sm:$0xff] }
  0x67   : > { %3263 = vmatprep.subr.bf16.mxu0 %v4292_v36  ;;  %3304 = vmatprep.subr.bf16.mxu1 %v4294_v37  ;;  %v4420_v6 = vcombine.high %v432_v0, %v448_v1  ;;  %v4422_v7 = vcombine.high %v433_v2, %v449_v3  ;;  %v464_v8 = vld [vmem:[#allocation5 + $0x900] sm:$0xff]  ;;  %v465_v10 = vld [vmem:[#allocation5 + $0x908] sm:$0xff]  ;;  %v4419_v12 = vcombine.low %v432_v0, %v448_v1 }
  0x68   : > { %v480_v9 = vld [vmem:[#allocation5 + $0x980] sm:$0xff]  ;;  %v481_v11 = vld [vmem:[#allocation5 + $0x988] sm:$0xff]  ;;  %v4421_v13 = vcombine.low %v433_v2, %v449_v3  ;;  %v178_v2 = vld [vmem:[#allocation5 + $0x10] sm:$0xff] }
  0x69   : > { %v4452_v14 = vcombine.high %v464_v8, %v480_v9  ;;  %v4454_v15 = vcombine.high %v465_v10, %v481_v11  ;;  %v496_v16 = vld [vmem:[#allocation5 + $0xa00] sm:$0xff]  ;;  %v497_v18 = vld [vmem:[#allocation5 + $0xa08] sm:$0xff]  ;;  %v4451_v20 = vcombine.low %v464_v8, %v480_v9  ;;  %v4453_v21 = vcombine.low %v465_v10, %v481_v11  ;;  %v194_v3 = vld [vmem:[#allocation5 + $0x90] sm:$0xff] }
  0x6a   : > { %3264 = vmatpush1.bf16.msra.mxu0 %v4291_v42  ;;  %3305 = vmatpush1.bf16.msra.mxu1 %v4293_v43  ;;  %v512_v17 = vld [vmem:[#allocation5 + $0xa80] sm:$0xff]  ;;  %v513_v19 = vld [vmem:[#allocation5 + $0xa88] sm:$0xff]  ;;  %v4168_v8 = vcombine.high %v178_v2, %v194_v3  ;;  %v210_v10 = vld [vmem:[#allocation5 + $0x110] sm:$0xff] }
  0x6b   : > { %3265 = vmatprep.subr.bf16.mxu0 %v4324_v44  ;;  %3306 = vmatprep.subr.bf16.mxu1 %v4326_v45  ;;  %v4484_v22 = vcombine.high %v496_v16, %v512_v17  ;;  %v4486_v23 = vcombine.high %v497_v18, %v513_v19  ;;  %v528_v24 = vld [vmem:[#allocation5 + $0xb00] sm:$0xff]  ;;  %v529_v26 = vld [vmem:[#allocation5 + $0xb08] sm:$0xff]  ;;  %v4483_v28 = vcombine.low %v496_v16, %v512_v17  ;;  %v226_v11 = vld [vmem:[#allocation5 + $0x190] sm:$0xff] }
  0x6c   : > { %v544_v25 = vld [vmem:[#allocation5 + $0xb80] sm:$0xff]  ;;  %v545_v27 = vld [vmem:[#allocation5 + $0xb88] sm:$0xff]  ;;  %v4485_v29 = vcombine.low %v497_v18, %v513_v19  ;;  %v4200_v17 = vcombine.high %v210_v10, %v226_v11  ;;  %v242_v19 = vld [vmem:[#allocation5 + $0x210] sm:$0xff] }
  0x6d   : > { %v4516_v30 = vcombine.high %v528_v24, %v544_v25  ;;  %v4518_v31 = vcombine.high %v529_v26, %v545_v27  ;;  %v560_v32 = vld [vmem:[#allocation5 + $0xc00] sm:$0xff]  ;;  %v561_v34 = vld [vmem:[#allocation5 + $0xc08] sm:$0xff]  ;;  %v4515_v36 = vcombine.low %v528_v24, %v544_v25  ;;  %v4517_v37 = vcombine.low %v529_v26, %v545_v27  ;;  %v274_v26 = vld [vmem:[#allocation5 + $0x310] sm:$0xff] }
  0x6e   : > { %3266 = vmatpush1.bf16.msra.mxu0 %v4323_v50  ;;  %3307 = vmatpush1.bf16.msra.mxu1 %v4325_v51  ;;  %v576_v33 = vld [vmem:[#allocation5 + $0xc80] sm:$0xff]  ;;  %v577_v35 = vld [vmem:[#allocation5 + $0xc88] sm:$0xff]  ;;  %v290_v27 = vld [vmem:[#allocation5 + $0x390] sm:$0xff] }
  0x6f   : > { %3267 = vmatprep.subr.bf16.mxu0 %v4356_v52  ;;  %3308 = vmatprep.subr.bf16.mxu1 %v4358_v54  ;;  %v4548_v38 = vcombine.high %v560_v32, %v576_v33  ;;  %v4550_v39 = vcombine.high %v561_v34, %v577_v35  ;;  %v592_v40 = vld [vmem:[#allocation5 + $0xd00] sm:$0xff]  ;;  %v593_v42 = vld [vmem:[#allocation5 + $0xd08] sm:$0xff]  ;;  %v4547_v44 = vcombine.low %v560_v32, %v576_v33 }
  0x70   : > { %v608_v41 = vld [vmem:[#allocation5 + $0xd80] sm:$0xff]  ;;  %v609_v43 = vld [vmem:[#allocation5 + $0xd88] sm:$0xff]  ;;  %v4549_v45 = vcombine.low %v561_v34, %v577_v35  ;;  %v4264_v32 = vcombine.high %v274_v26, %v290_v27  ;;  %v306_v34 = vld [vmem:[#allocation5 + $0x410] sm:$0xff] }
  0x71   : > { %v4580_v46 = vcombine.high %v592_v40, %v608_v41  ;;  %v4582_v47 = vcombine.high %v593_v42, %v609_v43  ;;  %v624_v48 = vld [vmem:[#allocation5 + $0xe00] sm:$0xff]  ;;  %v625_v50 = vld [vmem:[#allocation5 + $0xe08] sm:$0xff]  ;;  %v4579_v52 = vcombine.low %v592_v40, %v608_v41  ;;  %v4581_v54 = vcombine.low %v593_v42, %v609_v43  ;;  %v322_v35 = vld [vmem:[#allocation5 + $0x490] sm:$0xff] }
  0x72   : > { %3268 = vmatpush1.bf16.msra.mxu0 %v4355_v60  ;;  %3309 = vmatpush1.bf16.msra.mxu1 %v4357_v61  ;;  %v640_v49 = vld [vmem:[#allocation5 + $0xe80] sm:$0xff]  ;;  %v641_v51 = vld [vmem:[#allocation5 + $0xe88] sm:$0xff]  ;;  %v4296_v40 = vcombine.high %v306_v34, %v322_v35  ;;  %v338_v42 = vld [vmem:[#allocation5 + $0x510] sm:$0xff] }
  0x73   : > { %3269 = vmatprep.subr.bf16.mxu0 %v4388_v62  ;;  %3310 = vmatprep.subr.bf16.mxu1 %v4390_v63  ;;  %v4612_v55 = vcombine.high %v624_v48, %v640_v49  ;;  %v4614_v56 = vcombine.high %v625_v50, %v641_v51  ;;  %v656_v58 = vld [vmem:[#allocation5 + $0xf00] sm:$0xff]  ;;  %v657_v60 = vld [vmem:[#allocation5 + $0xf08] sm:$0xff]  ;;  %v4611_v62 = vcombine.low %v624_v48, %v640_v49  ;;  %v354_v43 = vld [vmem:[#allocation5 + $0x590] sm:$0xff] }
  0x74   : > { %v672_v59 = vld [vmem:[#allocation5 + $0xf80] sm:$0xff]  ;;  %v673_v61 = vld [vmem:[#allocation5 + $0xf88] sm:$0xff]  ;;  %v4613_v63 = vcombine.low %v625_v50, %v641_v51  ;;  %v4328_v48 = vcombine.high %v338_v42, %v354_v43  ;;  %v370_v50 = vld [vmem:[#allocation5 + $0x610] sm:$0xff] }
  0x75   : > { %v4644_v0 = vcombine.high %v656_v58, %v672_v59  ;;  %v4646_v1 = vcombine.high %v657_v60, %v673_v61  ;;  %v386_v51 = vld [vmem:[#allocation5 + $0x690] sm:$0xff] }
  0x76   : > { %3270 = vmatpush1.bf16.msra.mxu0 %v4387_v4  ;;  %3311 = vmatpush1.bf16.msra.mxu1 %v4389_v5  ;;  %v179_v4 = vld [vmem:[#allocation5 + $0x18] sm:$0xff] }
  0x77   : > { %3271 = vmatprep.subr.bf16.mxu0 %v4420_v6  ;;  %3312 = vmatprep.subr.bf16.mxu1 %v4422_v7  ;;  %v195_v5 = vld [vmem:[#allocation5 + $0x98] sm:$0xff]  ;;  %v4643_v6 = vcombine.low %v656_v58, %v672_v59  ;;  %v4645_v7 = vcombine.low %v657_v60, %v673_v61  ;;  %v4360_v58 = vcombine.high %v370_v50, %v386_v51  ;;  %v402_v60 = vld [vmem:[#allocation5 + $0x710] sm:$0xff] }
  0x78   : > { %v4170_v9 = vcombine.high %v179_v4, %v195_v5  ;;  %v4169_v16 = vcombine.low %v179_v4, %v195_v5  ;;  %v418_v61 = vld [vmem:[#allocation5 + $0x790] sm:$0xff] }
  0x79   : > { %v434_v4 = vld [vmem:[#allocation5 + $0x810] sm:$0xff] }
  0x7a   : > { %3272 = vmatpush1.bf16.msra.mxu0 %v4419_v12  ;;  %3313 = vmatpush1.bf16.msra.mxu1 %v4421_v13  ;;  %v5086_v12 = vcombine.low %v5076_v53, %v5076_v53  ;;  %v211_v13 = vld [vmem:[#allocation5 + $0x118] sm:$0xff]  ;;  %v4199_v53 = vcombine.low %v210_v10, %v226_v11  ;;  %v450_v5 = vld [vmem:[#allocation5 + $0x890] sm:$0xff] }
  0x7b   : > { %3273 = vmatprep.subr.bf16.mxu0 %v4452_v14  ;;  %3314 = vmatprep.subr.bf16.mxu1 %v4454_v15  ;;  %v227_v14 = vld [vmem:[#allocation5 + $0x198] sm:$0xff]  ;;  %v4167_v15 = vcombine.low %v178_v2, %v194_v3  ;;  %v4392_v2 = vcombine.high %v402_v60, %v418_v61  ;;  %v4424_v10 = vcombine.high %v434_v4, %v450_v5 }
  0x7c   : > { %v4202_v18 = vcombine.high %v211_v13, %v227_v14 }
  0x7e   : > { %3274 = vmatpush1.bf16.msra.mxu0 %v4451_v20  ;;  %3315 = vmatpush1.bf16.msra.mxu1 %v4453_v21  ;;  %v258_v20 = vld [vmem:[#allocation5 + $0x290] sm:$0xff]  ;;  %v243_v21 = vld [vmem:[#allocation5 + $0x218] sm:$0xff] }
  0x7f   : > { %3275 = vmatprep.subr.bf16.mxu0 %v4484_v22  ;;  %3316 = vmatprep.subr.bf16.mxu1 %v4486_v23  ;;  %v259_v22 = vld [vmem:[#allocation5 + $0x298] sm:$0xff]  ;;  %v4201_v23 = vcombine.low %v211_v13, %v227_v14  ;;  %v4232_v24 = vcombine.high %v242_v19, %v258_v20  ;;  %v466_v13 = vld [vmem:[#allocation5 + $0x910] sm:$0xff] }
  0x80   : > { %v4234_v25 = vcombine.high %v243_v21, %v259_v22  ;;  %v482_v14 = vld [vmem:[#allocation5 + $0x990] sm:$0xff] }
  0x82   : > { %3276 = vmatpush1.bf16.msra.mxu0 %v4483_v28  ;;  %3317 = vmatpush1.bf16.msra.mxu1 %v4485_v29  ;;  %v275_v28 = vld [vmem:[#allocation5 + $0x318] sm:$0xff] }
  0x83   : > { %3277 = vmatprep.subr.bf16.mxu0 %v4516_v30  ;;  %3318 = vmatprep.subr.bf16.mxu1 %v4518_v31  ;;  %v291_v29 = vld [vmem:[#allocation5 + $0x398] sm:$0xff]  ;;  %v4231_v30 = vcombine.low %v242_v19, %v258_v20  ;;  %v4233_v31 = vcombine.low %v243_v21, %v259_v22  ;;  %v4456_v19 = vcombine.high %v466_v13, %v482_v14  ;;  %v498_v21 = vld [vmem:[#allocation5 + $0xa10] sm:$0xff] }
  0x84   : > { %v4266_v33 = vcombine.high %v275_v28, %v291_v29  ;;  %v514_v22 = vld [vmem:[#allocation5 + $0xa90] sm:$0xff] }
  0x86   : > { %3278 = vmatpush1.bf16.msra.mxu0 %v4515_v36  ;;  %3319 = vmatpush1.bf16.msra.mxu1 %v4517_v37  ;;  %v307_v36 = vld [vmem:[#allocation5 + $0x418] sm:$0xff] }
  0x87   : > { %3279 = vmatprep.subr.bf16.mxu0 %v4548_v38  ;;  %3320 = vmatprep.subr.bf16.mxu1 %v4550_v39  ;;  %v323_v37 = vld [vmem:[#allocation5 + $0x498] sm:$0xff]  ;;  %v4263_v38 = vcombine.low %v274_v26, %v290_v27  ;;  %v4265_v39 = vcombine.low %v275_v28, %v291_v29  ;;  %v4488_v26 = vcombine.high %v498_v21, %v514_v22  ;;  %v530_v28 = vld [vmem:[#allocation5 + $0xb10] sm:$0xff] }
  0x88   : > { %v4298_v41 = vcombine.high %v307_v36, %v323_v37  ;;  %v546_v29 = vld [vmem:[#allocation5 + $0xb90] sm:$0xff] }
  0x8a   : > { %3280 = vmatpush1.bf16.msra.mxu0 %v4547_v44  ;;  %3321 = vmatpush1.bf16.msra.mxu1 %v4549_v45  ;;  %v339_v44 = vld [vmem:[#allocation5 + $0x518] sm:$0xff] }
  0x8b   : > { %3281 = vmatprep.subr.bf16.mxu0 %v4580_v46  ;;  %3322 = vmatprep.subr.bf16.mxu1 %v4582_v47  ;;  %v355_v45 = vld [vmem:[#allocation5 + $0x598] sm:$0xff]  ;;  %v4295_v46 = vcombine.low %v306_v34, %v322_v35  ;;  %v4297_v47 = vcombine.low %v307_v36, %v323_v37  ;;  %v4520_v34 = vcombine.high %v530_v28, %v546_v29  ;;  %v562_v36 = vld [vmem:[#allocation5 + $0xc10] sm:$0xff] }
  0x8c   : > { %v4330_v49 = vcombine.high %v339_v44, %v355_v45  ;;  %v578_v37 = vld [vmem:[#allocation5 + $0xc90] sm:$0xff] }
  0x8e   : > { %3282 = vmatpush1.bf16.msra.mxu0 %v4579_v52  ;;  %3323 = vmatpush1.bf16.msra.mxu1 %v4581_v54  ;;  %v371_v52 = vld [vmem:[#allocation5 + $0x618] sm:$0xff] }
  0x8f   : > { %3283 = vmatprep.subr.bf16.mxu0 %v4612_v55  ;;  %3324 = vmatprep.subr.bf16.mxu1 %v4614_v56  ;;  %v387_v54 = vld [vmem:[#allocation5 + $0x698] sm:$0xff]  ;;  %v4327_v55 = vcombine.low %v338_v42, %v354_v43  ;;  %v4329_v56 = vcombine.low %v339_v44, %v355_v45  ;;  %v4552_v42 = vcombine.high %v562_v36, %v578_v37  ;;  %v594_v44 = vld [vmem:[#allocation5 + $0xd10] sm:$0xff] }
  0x90   : > { %v4362_v59 = vcombine.high %v371_v52, %v387_v54  ;;  %v610_v45 = vld [vmem:[#allocation5 + $0xd90] sm:$0xff] }
  0x92   : > { %3284 = vmatpush1.bf16.msra.mxu0 %v4611_v62  ;;  %3325 = vmatpush1.bf16.msra.mxu1 %v4613_v63  ;;  %v403_v62 = vld [vmem:[#allocation5 + $0x718] sm:$0xff] }
  0x93   : > { %3285 = vmatprep.subr.bf16.mxu0 %v4644_v0  ;;  %3326 = vmatprep.subr.bf16.mxu1 %v4646_v1  ;;  %v419_v63 = vld [vmem:[#allocation5 + $0x798] sm:$0xff]  ;;  %v4359_v0 = vcombine.low %v370_v50, %v386_v51  ;;  %v4361_v1 = vcombine.low %v371_v52, %v387_v54  ;;  %v4584_v50 = vcombine.high %v594_v44, %v610_v45  ;;  %v626_v52 = vld [vmem:[#allocation5 + $0xe10] sm:$0xff] }
  0x94   : > { %v4394_v3 = vcombine.high %v403_v62, %v419_v63  ;;  %v642_v54 = vld [vmem:[#allocation5 + $0xe90] sm:$0xff] }
  0x96   : > { %3286 = vmatpush1.bf16.msra.mxu0 %v4643_v6  ;;  %3327 = vmatpush1.bf16.msra.mxu1 %v4645_v7  ;;  %v435_v6 = vld [vmem:[#allocation5 + $0x818] sm:$0xff] }
  0x97   : > { %3337 = vmatprep.subr.bf16.mxu0 %v4168_v8  ;;  %3378 = vmatprep.subr.bf16.mxu1 %v4170_v9  ;;  %v451_v7 = vld [vmem:[#allocation5 + $0x898] sm:$0xff]  ;;  %v4391_v8 = vcombine.low %v402_v60, %v418_v61  ;;  %v4393_v9 = vcombine.low %v403_v62, %v419_v63  ;;  %v4616_v60 = vcombine.high %v626_v52, %v642_v54  ;;  %v658_v62 = vld [vmem:[#allocation5 + $0xf10] sm:$0xff] }
  0x98   : > { %v4426_v11 = vcombine.high %v435_v6, %v451_v7  ;;  %v674_v63 = vld [vmem:[#allocation5 + $0xf90] sm:$0xff] }
  0x99   : > { %3288 = vmatmul.mubr.bf16.vlgmr.msra.gmra.mrb[0].mxu0 %v5086_v12  ;;  %3329 = vmatmul.mubr.bf16.vlgmr.msra.gmra.mrb[0].mxu1 %v5086_v12 }
  0x9a   : > { %3338 = vmatpush1.bf16.msra.mxu0 %v4167_v15  ;;  %3379 = vmatpush1.bf16.msra.mxu1 %v4169_v16  ;;  %v467_v15 = vld [vmem:[#allocation5 + $0x918] sm:$0xff] }
  0x9b   : > { %3339 = vmatprep.subr.bf16.mxu0 %v4200_v17  ;;  %3380 = vmatprep.subr.bf16.mxu1 %v4202_v18  ;;  %v483_v16 = vld [vmem:[#allocation5 + $0x998] sm:$0xff]  ;;  %v4423_v17 = vcombine.low %v434_v4, %v450_v5  ;;  %v4425_v18 = vcombine.low %v435_v6, %v451_v7  ;;  %v4648_v4 = vcombine.high %v658_v62, %v674_v63  ;;  %v180_v6 = vld [vmem:[#allocation5 + $0x20] sm:$0xff] }
  0x9c   : > { %3369 = vmatprep.mubr.bf16.mxu0 %v5080_v57  ;;  %3410 = vmatprep.mubr.bf16.mxu1 %v5080_v57  ;;  %v4458_v20 = vcombine.high %v467_v15, %v483_v16  ;;  %v196_v7 = vld [vmem:[#allocation5 + $0xa0] sm:$0xff] }
  0x9e   : > { %3340 = vmatpush1.bf16.msra.mxu0 %v4199_v53  ;;  %3381 = vmatpush1.bf16.msra.mxu1 %v4201_v23  ;;  %v499_v53 = vld [vmem:[#allocation5 + $0xa18] sm:$0xff] }
  0x9f   : > { %3341 = vmatprep.subr.bf16.mxu0 %v4232_v24  ;;  %3382 = vmatprep.subr.bf16.mxu1 %v4234_v25  ;;  %v515_v23 = vld [vmem:[#allocation5 + $0xa98] sm:$0xff]  ;;  %v4455_v24 = vcombine.low %v466_v13, %v482_v14  ;;  %v4457_v25 = vcombine.low %v467_v15, %v483_v16  ;;  %v4172_v13 = vcombine.high %v180_v6, %v196_v7  ;;  %v212_v15 = vld [vmem:[#allocation5 + $0x120] sm:$0xff] }
  0xa0   : > { %v4490_v27 = vcombine.high %v499_v53, %v515_v23  ;;  %v228_v16 = vld [vmem:[#allocation5 + $0x1a0] sm:$0xff] }
  0xa2   : > { %3342 = vmatpush1.bf16.msra.mxu0 %v4231_v30  ;;  %3383 = vmatpush1.bf16.msra.mxu1 %v4233_v31  ;;  %v531_v30 = vld [vmem:[#allocation5 + $0xb18] sm:$0xff] }
  0xa3   : > { %3343 = vmatprep.subr.bf16.mxu0 %v4264_v32  ;;  %3384 = vmatprep.subr.bf16.mxu1 %v4266_v33  ;;  %v547_v31 = vld [vmem:[#allocation5 + $0xb98] sm:$0xff]  ;;  %v4487_v32 = vcombine.low %v498_v21, %v514_v22  ;;  %v4489_v33 = vcombine.low %v499_v53, %v515_v23  ;;  %v4204_v21 = vcombine.high %v212_v15, %v228_v16  ;;  %v244_v53 = vld [vmem:[#allocation5 + $0x220] sm:$0xff] }
  0xa4   : > { %v4522_v35 = vcombine.high %v531_v30, %v547_v31  ;;  %v260_v23 = vld [vmem:[#allocation5 + $0x2a0] sm:$0xff] }
  0xa6   : > { %3344 = vmatpush1.bf16.msra.mxu0 %v4263_v38  ;;  %3385 = vmatpush1.bf16.msra.mxu1 %v4265_v39  ;;  %v563_v38 = vld [vmem:[#allocation5 + $0xc18] sm:$0xff] }
  0xa7   : > { %3345 = vmatprep.subr.bf16.mxu0 %v4296_v40  ;;  %3386 = vmatprep.subr.bf16.mxu1 %v4298_v41  ;;  %v579_v39 = vld [vmem:[#allocation5 + $0xc98] sm:$0xff]  ;;  %v4519_v40 = vcombine.low %v530_v28, %v546_v29  ;;  %v4521_v41 = vcombine.low %v531_v30, %v547_v31  ;;  %v4236_v28 = vcombine.high %v244_v53, %v260_v23  ;;  %v276_v30 = vld [vmem:[#allocation5 + $0x320] sm:$0xff] }
  0xa8   : > { %v4554_v43 = vcombine.high %v563_v38, %v579_v39  ;;  %v292_v31 = vld [vmem:[#allocation5 + $0x3a0] sm:$0xff] }
  0xaa   : > { %3346 = vmatpush1.bf16.msra.mxu0 %v4295_v46  ;;  %3387 = vmatpush1.bf16.msra.mxu1 %v4297_v47  ;;  %v595_v46 = vld [vmem:[#allocation5 + $0xd18] sm:$0xff] }
  0xab   : > { %3347 = vmatprep.subr.bf16.mxu0 %v4328_v48  ;;  %3388 = vmatprep.subr.bf16.mxu1 %v4330_v49  ;;  %v611_v47 = vld [vmem:[#allocation5 + $0xd98] sm:$0xff]  ;;  %v4551_v48 = vcombine.low %v562_v36, %v578_v37  ;;  %v4553_v49 = vcombine.low %v563_v38, %v579_v39  ;;  %v4268_v36 = vcombine.high %v276_v30, %v292_v31  ;;  %v308_v38 = vld [vmem:[#allocation5 + $0x420] sm:$0xff] }
  0xac   : > { %v4586_v51 = vcombine.high %v595_v46, %v611_v47  ;;  %v324_v39 = vld [vmem:[#allocation5 + $0x4a0] sm:$0xff] }
  0xae   : > { %3348 = vmatpush1.bf16.msra.mxu0 %v4327_v55  ;;  %3389 = vmatpush1.bf16.msra.mxu1 %v4329_v56  ;;  %v627_v55 = vld [vmem:[#allocation5 + $0xe18] sm:$0xff] }
  0xaf   : > { %3349 = vmatprep.subr.bf16.mxu0 %v4360_v58  ;;  %3390 = vmatprep.subr.bf16.mxu1 %v4362_v59  ;;  %v643_v56 = vld [vmem:[#allocation5 + $0xe98] sm:$0xff]  ;;  %v4583_v58 = vcombine.low %v594_v44, %v610_v45  ;;  %v4585_v59 = vcombine.low %v595_v46, %v611_v47  ;;  %v4300_v44 = vcombine.high %v308_v38, %v324_v39  ;;  %v340_v46 = vld [vmem:[#allocation5 + $0x520] sm:$0xff] }
  0xb0   : > { %v4618_v61 = vcombine.high %v627_v55, %v643_v56  ;;  %v356_v47 = vld [vmem:[#allocation5 + $0x5a0] sm:$0xff] }
  0xb2   : > { %3350 = vmatpush1.bf16.msra.mxu0 %v4359_v0  ;;  %3391 = vmatpush1.bf16.msra.mxu1 %v4361_v1  ;;  %v659_v0 = vld [vmem:[#allocation5 + $0xf18] sm:$0xff] }
  0xb3   : > { %3351 = vmatprep.subr.bf16.mxu0 %v4392_v2  ;;  %3392 = vmatprep.subr.bf16.mxu1 %v4394_v3  ;;  %v675_v1 = vld [vmem:[#allocation5 + $0xf98] sm:$0xff]  ;;  %v4615_v2 = vcombine.low %v626_v52, %v642_v54  ;;  %v4617_v3 = vcombine.low %v627_v55, %v643_v56  ;;  %v4332_v52 = vcombine.high %v340_v46, %v356_v47  ;;  %v372_v55 = vld [vmem:[#allocation5 + $0x620] sm:$0xff] }
  0xb4   : > { %v4650_v5 = vcombine.high %v659_v0, %v675_v1  ;;  %v388_v56 = vld [vmem:[#allocation5 + $0x6a0] sm:$0xff] }
  0xb6   : > { %3352 = vmatpush1.bf16.msra.mxu0 %v4391_v8  ;;  %3393 = vmatpush1.bf16.msra.mxu1 %v4393_v9  ;;  %v181_v8 = vld [vmem:[#allocation5 + $0x28] sm:$0xff] }
  0xb7   : > { %3353 = vmatprep.subr.bf16.mxu0 %v4424_v10  ;;  %3394 = vmatprep.subr.bf16.mxu1 %v4426_v11  ;;  %v197_v9 = vld [vmem:[#allocation5 + $0xa8] sm:$0xff]  ;;  %v4647_v10 = vcombine.low %v658_v62, %v674_v63  ;;  %v4649_v11 = vcombine.low %v659_v0, %v675_v1  ;;  %v4364_v62 = vcombine.high %v372_v55, %v388_v56  ;;  %v404_v0 = vld [vmem:[#allocation5 + $0x720] sm:$0xff] }
  0xb8   : > { %v4174_v14 = vcombine.high %v181_v8, %v197_v9  ;;  %v420_v1 = vld [vmem:[#allocation5 + $0x7a0] sm:$0xff] }
  0xba   : > { %3354 = vmatpush1.bf16.msra.mxu0 %v4423_v17  ;;  %3395 = vmatpush1.bf16.msra.mxu1 %v4425_v18  ;;  %v213_v17 = vld [vmem:[#allocation5 + $0x128] sm:$0xff] }
  0xbb   : > { %3355 = vmatprep.subr.bf16.mxu0 %v4456_v19  ;;  %3396 = vmatprep.subr.bf16.mxu1 %v4458_v20  ;;  %v229_v18 = vld [vmem:[#allocation5 + $0x1a8] sm:$0xff]  ;;  %v4171_v19 = vcombine.low %v180_v6, %v196_v7  ;;  %v4173_v20 = vcombine.low %v181_v8, %v197_v9  ;;  %v4396_v6 = vcombine.high %v404_v0, %v420_v1  ;;  %v436_v8 = vld [vmem:[#allocation5 + $0x820] sm:$0xff] }
  0xbc   : > { %v4206_v22 = vcombine.high %v213_v17, %v229_v18  ;;  %v452_v9 = vld [vmem:[#allocation5 + $0x8a0] sm:$0xff] }
  0xbe   : > { %3356 = vmatpush1.bf16.msra.mxu0 %v4455_v24  ;;  %3397 = vmatpush1.bf16.msra.mxu1 %v4457_v25  ;;  %v245_v24 = vld [vmem:[#allocation5 + $0x228] sm:$0xff] }
  0xbf   : > { %3357 = vmatprep.subr.bf16.mxu0 %v4488_v26  ;;  %3398 = vmatprep.subr.bf16.mxu1 %v4490_v27  ;;  %v261_v25 = vld [vmem:[#allocation5 + $0x2a8] sm:$0xff]  ;;  %v4203_v26 = vcombine.low %v212_v15, %v228_v16  ;;  %v4205_v27 = vcombine.low %v213_v17, %v229_v18  ;;  %v4428_v15 = vcombine.high %v436_v8, %v452_v9  ;;  %v468_v17 = vld [vmem:[#allocation5 + $0x920] sm:$0xff] }
  0xc0   : > { %v4238_v29 = vcombine.high %v245_v24, %v261_v25  ;;  %v484_v18 = vld [vmem:[#allocation5 + $0x9a0] sm:$0xff] }
  0xc2   : > { %3358 = vmatpush1.bf16.msra.mxu0 %v4487_v32  ;;  %3399 = vmatpush1.bf16.msra.mxu1 %v4489_v33  ;;  %v277_v32 = vld [vmem:[#allocation5 + $0x328] sm:$0xff] }
  0xc3   : > { %3359 = vmatprep.subr.bf16.mxu0 %v4520_v34  ;;  %3400 = vmatprep.subr.bf16.mxu1 %v4522_v35  ;;  %v293_v33 = vld [vmem:[#allocation5 + $0x3a8] sm:$0xff]  ;;  %v4235_v34 = vcombine.low %v244_v53, %v260_v23  ;;  %v4237_v35 = vcombine.low %v245_v24, %v261_v25  ;;  %v4460_v53 = vcombine.high %v468_v17, %v484_v18  ;;  %v500_v24 = vld [vmem:[#allocation5 + $0xa20] sm:$0xff] }
  0xc4   : > { %v4270_v37 = vcombine.high %v277_v32, %v293_v33  ;;  %v516_v25 = vld [vmem:[#allocation5 + $0xaa0] sm:$0xff] }
  0xc6   : > { %3360 = vmatpush1.bf16.msra.mxu0 %v4519_v40  ;;  %3401 = vmatpush1.bf16.msra.mxu1 %v4521_v41  ;;  %v309_v40 = vld [vmem:[#allocation5 + $0x428] sm:$0xff] }
  0xc7   : > { %3361 = vmatprep.subr.bf16.mxu0 %v4552_v42  ;;  %3402 = vmatprep.subr.bf16.mxu1 %v4554_v43  ;;  %v325_v41 = vld [vmem:[#allocation5 + $0x4a8] sm:$0xff]  ;;  %v4267_v42 = vcombine.low %v276_v30, %v292_v31  ;;  %v4269_v43 = vcombine.low %v277_v32, %v293_v33  ;;  %v4492_v30 = vcombine.high %v500_v24, %v516_v25  ;;  %v532_v32 = vld [vmem:[#allocation5 + $0xb20] sm:$0xff] }
  0xc8   : > { %v4302_v45 = vcombine.high %v309_v40, %v325_v41  ;;  %v548_v33 = vld [vmem:[#allocation5 + $0xba0] sm:$0xff] }
  0xca   : > { %3362 = vmatpush1.bf16.msra.mxu0 %v4551_v48  ;;  %3403 = vmatpush1.bf16.msra.mxu1 %v4553_v49  ;;  %v341_v48 = vld [vmem:[#allocation5 + $0x528] sm:$0xff] }
  0xcb   : > { %3363 = vmatprep.subr.bf16.mxu0 %v4584_v50  ;;  %3404 = vmatprep.subr.bf16.mxu1 %v4586_v51  ;;  %v357_v49 = vld [vmem:[#allocation5 + $0x5a8] sm:$0xff]  ;;  %v4299_v50 = vcombine.low %v308_v38, %v324_v39  ;;  %v4301_v51 = vcombine.low %v309_v40, %v325_v41  ;;  %v4524_v38 = vcombine.high %v532_v32, %v548_v33  ;;  %v564_v40 = vld [vmem:[#allocation5 + $0xc20] sm:$0xff] }
  0xcc   : > { %v4334_v54 = vcombine.high %v341_v48, %v357_v49  ;;  %v580_v41 = vld [vmem:[#allocation5 + $0xca0] sm:$0xff] }
  0xce   : > { %3364 = vmatpush1.bf16.msra.mxu0 %v4583_v58  ;;  %3405 = vmatpush1.bf16.msra.mxu1 %v4585_v59  ;;  %v373_v58 = vld [vmem:[#allocation5 + $0x628] sm:$0xff] }
  0xcf   : > { %3365 = vmatprep.subr.bf16.mxu0 %v4616_v60  ;;  %3406 = vmatprep.subr.bf16.mxu1 %v4618_v61  ;;  %v389_v59 = vld [vmem:[#allocation5 + $0x6a8] sm:$0xff]  ;;  %v4331_v60 = vcombine.low %v340_v46, %v356_v47  ;;  %v4333_v61 = vcombine.low %v341_v48, %v357_v49  ;;  %v4556_v46 = vcombine.high %v564_v40, %v580_v41  ;;  %v596_v48 = vld [vmem:[#allocation5 + $0xd20] sm:$0xff] }
  0xd0   : > { %v4366_v63 = vcombine.high %v373_v58, %v389_v59  ;;  %v612_v49 = vld [vmem:[#allocation5 + $0xda0] sm:$0xff] }
  0xd2   : > { %3366 = vmatpush1.bf16.msra.mxu0 %v4615_v2  ;;  %3407 = vmatpush1.bf16.msra.mxu1 %v4617_v3  ;;  %v405_v2 = vld [vmem:[#allocation5 + $0x728] sm:$0xff] }
  0xd3   : > { %3367 = vmatprep.subr.bf16.mxu0 %v4648_v4  ;;  %3408 = vmatprep.subr.bf16.mxu1 %v4650_v5  ;;  %v421_v3 = vld [vmem:[#allocation5 + $0x7a8] sm:$0xff]  ;;  %v4363_v4 = vcombine.low %v372_v55, %v388_v56  ;;  %v4365_v5 = vcombine.low %v373_v58, %v389_v59  ;;  %v4588_v55 = vcombine.high %v596_v48, %v612_v49  ;;  %v628_v58 = vld [vmem:[#allocation5 + $0xe20] sm:$0xff] }
  0xd4   : > { %v4398_v7 = vcombine.high %v405_v2, %v421_v3  ;;  %v644_v59 = vld [vmem:[#allocation5 + $0xea0] sm:$0xff] }
  0xd6   : > { %3368 = vmatpush1.bf16.msra.mxu0 %v4647_v10  ;;  %3409 = vmatpush1.bf16.msra.mxu1 %v4649_v11  ;;  %v437_v10 = vld [vmem:[#allocation5 + $0x828] sm:$0xff] }
  0xd7   : > { %3419 = vmatprep.subr.bf16.mxu0 %v4172_v13  ;;  %3460 = vmatprep.subr.bf16.mxu1 %v4174_v14  ;;  %v453_v11 = vld [vmem:[#allocation5 + $0x8a8] sm:$0xff]  ;;  %v4395_v13 = vcombine.low %v404_v0, %v420_v1  ;;  %v4397_v14 = vcombine.low %v405_v2, %v421_v3  ;;  %v4620_v0 = vcombine.high %v628_v58, %v644_v59  ;;  %v660_v2 = vld [vmem:[#allocation5 + $0xf20] sm:$0xff] }
  0xd8   : > { %v4430_v16 = vcombine.high %v437_v10, %v453_v11  ;;  %v676_v3 = vld [vmem:[#allocation5 + $0xfa0] sm:$0xff] }
  0xd9   : > { %3370 = vmatmul.mubr.bf16.vlgmr.msra.gmra.mrb[4].mxu0 %v5086_v12  ;;  %3411 = vmatmul.mubr.bf16.vlgmr.msra.gmra.mrb[4].mxu1 %v5086_v12 }
  0xda   : > { %3420 = vmatpush1.bf16.msra.mxu0 %v4171_v19  ;;  %3461 = vmatpush1.bf16.msra.mxu1 %v4173_v20  ;;  %v469_v19 = vld [vmem:[#allocation5 + $0x928] sm:$0xff] }
  0xdb   : > { %3421 = vmatprep.subr.bf16.mxu0 %v4204_v21  ;;  %3462 = vmatprep.subr.bf16.mxu1 %v4206_v22  ;;  %v485_v20 = vld [vmem:[#allocation5 + $0x9a8] sm:$0xff]  ;;  %v4427_v21 = vcombine.low %v436_v8, %v452_v9  ;;  %v4429_v22 = vcombine.low %v437_v10, %v453_v11  ;;  %v4652_v8 = vcombine.high %v660_v2, %v676_v3  ;;  %v182_v10 = vld [vmem:[#allocation5 + $0x30] sm:$0xff] }
  0xdc   : > { %3451 = vmatprep.mubr.bf16.mxu0 %v5080_v57  ;;  %3492 = vmatprep.mubr.bf16.mxu1 %v5080_v57  ;;  %v4462_v23 = vcombine.high %v469_v19, %v485_v20  ;;  %v198_v11 = vld [vmem:[#allocation5 + $0xb0] sm:$0xff] }
  0xde   : > { %3422 = vmatpush1.bf16.msra.mxu0 %v4203_v26  ;;  %3463 = vmatpush1.bf16.msra.mxu1 %v4205_v27  ;;  %v501_v26 = vld [vmem:[#allocation5 + $0xa28] sm:$0xff] }
  0xdf   : > { %3423 = vmatprep.subr.bf16.mxu0 %v4236_v28  ;;  %3464 = vmatprep.subr.bf16.mxu1 %v4238_v29  ;;  %v517_v27 = vld [vmem:[#allocation5 + $0xaa8] sm:$0xff]  ;;  %v4459_v28 = vcombine.low %v468_v17, %v484_v18  ;;  %v4461_v29 = vcombine.low %v469_v19, %v485_v20  ;;  %v4176_v17 = vcombine.high %v182_v10, %v198_v11  ;;  %v214_v19 = vld [vmem:[#allocation5 + $0x130] sm:$0xff] }
  0xe0   : > { %v4494_v31 = vcombine.high %v501_v26, %v517_v27  ;;  %v230_v20 = vld [vmem:[#allocation5 + $0x1b0] sm:$0xff] }
  0xe2   : > { %3424 = vmatpush1.bf16.msra.mxu0 %v4235_v34  ;;  %3465 = vmatpush1.bf16.msra.mxu1 %v4237_v35  ;;  %v533_v34 = vld [vmem:[#allocation5 + $0xb28] sm:$0xff] }
  0xe3   : > { %3425 = vmatprep.subr.bf16.mxu0 %v4268_v36  ;;  %3466 = vmatprep.subr.bf16.mxu1 %v4270_v37  ;;  %v549_v35 = vld [vmem:[#allocation5 + $0xba8] sm:$0xff]  ;;  %v4491_v36 = vcombine.low %v500_v24, %v516_v25  ;;  %v4493_v37 = vcombine.low %v501_v26, %v517_v27  ;;  %v4208_v24 = vcombine.high %v214_v19, %v230_v20  ;;  %v246_v26 = vld [vmem:[#allocation5 + $0x230] sm:$0xff] }
  0xe4   : > { %v4526_v39 = vcombine.high %v533_v34, %v549_v35  ;;  %v262_v27 = vld [vmem:[#allocation5 + $0x2b0] sm:$0xff] }
  0xe6   : > { %3426 = vmatpush1.bf16.msra.mxu0 %v4267_v42  ;;  %3467 = vmatpush1.bf16.msra.mxu1 %v4269_v43  ;;  %v565_v42 = vld [vmem:[#allocation5 + $0xc28] sm:$0xff] }
  0xe7   : > { %3427 = vmatprep.subr.bf16.mxu0 %v4300_v44  ;;  %3468 = vmatprep.subr.bf16.mxu1 %v4302_v45  ;;  %v581_v43 = vld [vmem:[#allocation5 + $0xca8] sm:$0xff]  ;;  %v4523_v44 = vcombine.low %v532_v32, %v548_v33  ;;  %v4525_v45 = vcombine.low %v533_v34, %v549_v35  ;;  %v4240_v32 = vcombine.high %v246_v26, %v262_v27  ;;  %v278_v34 = vld [vmem:[#allocation5 + $0x330] sm:$0xff] }
  0xe8   : > { %v4558_v47 = vcombine.high %v565_v42, %v581_v43  ;;  %v294_v35 = vld [vmem:[#allocation5 + $0x3b0] sm:$0xff] }
  0xea   : > { %3428 = vmatpush1.bf16.msra.mxu0 %v4299_v50  ;;  %3469 = vmatpush1.bf16.msra.mxu1 %v4301_v51  ;;  %v597_v50 = vld [vmem:[#allocation5 + $0xd28] sm:$0xff] }
  0xeb   : > { %3429 = vmatprep.subr.bf16.mxu0 %v4332_v52  ;;  %3470 = vmatprep.subr.bf16.mxu1 %v4334_v54  ;;  %v613_v51 = vld [vmem:[#allocation5 + $0xda8] sm:$0xff]  ;;  %v4555_v52 = vcombine.low %v564_v40, %v580_v41  ;;  %v4557_v54 = vcombine.low %v565_v42, %v581_v43  ;;  %v4272_v40 = vcombine.high %v278_v34, %v294_v35  ;;  %v310_v42 = vld [vmem:[#allocation5 + $0x430] sm:$0xff] }
  0xec   : > { %v4590_v56 = vcombine.high %v597_v50, %v613_v51  ;;  %v326_v43 = vld [vmem:[#allocation5 + $0x4b0] sm:$0xff] }
  0xee   : > { %3430 = vmatpush1.bf16.msra.mxu0 %v4331_v60  ;;  %3471 = vmatpush1.bf16.msra.mxu1 %v4333_v61  ;;  %v629_v60 = vld [vmem:[#allocation5 + $0xe28] sm:$0xff] }
  0xef   : > { %3431 = vmatprep.subr.bf16.mxu0 %v4364_v62  ;;  %3472 = vmatprep.subr.bf16.mxu1 %v4366_v63  ;;  %v645_v61 = vld [vmem:[#allocation5 + $0xea8] sm:$0xff]  ;;  %v4587_v62 = vcombine.low %v596_v48, %v612_v49  ;;  %v4589_v63 = vcombine.low %v597_v50, %v613_v51  ;;  %v4304_v48 = vcombine.high %v310_v42, %v326_v43  ;;  %v342_v50 = vld [vmem:[#allocation5 + $0x530] sm:$0xff] }
  0xf0   : > { %v4622_v1 = vcombine.high %v629_v60, %v645_v61  ;;  %v358_v51 = vld [vmem:[#allocation5 + $0x5b0] sm:$0xff] }
  0xf2   : > { %3432 = vmatpush1.bf16.msra.mxu0 %v4363_v4  ;;  %3473 = vmatpush1.bf16.msra.mxu1 %v4365_v5  ;;  %v661_v4 = vld [vmem:[#allocation5 + $0xf28] sm:$0xff] }
  0xf3   : > { %3433 = vmatprep.subr.bf16.mxu0 %v4396_v6  ;;  %3474 = vmatprep.subr.bf16.mxu1 %v4398_v7  ;;  %v677_v5 = vld [vmem:[#allocation5 + $0xfa8] sm:$0xff]  ;;  %v4619_v6 = vcombine.low %v628_v58, %v644_v59  ;;  %v4621_v7 = vcombine.low %v629_v60, %v645_v61  ;;  %v4336_v58 = vcombine.high %v342_v50, %v358_v51  ;;  %v374_v60 = vld [vmem:[#allocation5 + $0x630] sm:$0xff] }
  0xf4   : > { %v4654_v9 = vcombine.high %v661_v4, %v677_v5  ;;  %v390_v61 = vld [vmem:[#allocation5 + $0x6b0] sm:$0xff] }
  0xf6   : > { %3434 = vmatpush1.bf16.msra.mxu0 %v4395_v13  ;;  %3475 = vmatpush1.bf16.msra.mxu1 %v4397_v14  ;;  %v183_v13 = vld [vmem:[#allocation5 + $0x38] sm:$0xff] }
  0xf7   : > { %3435 = vmatprep.subr.bf16.mxu0 %v4428_v15  ;;  %3476 = vmatprep.subr.bf16.mxu1 %v4430_v16  ;;  %v199_v14 = vld [vmem:[#allocation5 + $0xb8] sm:$0xff]  ;;  %v4651_v15 = vcombine.low %v660_v2, %v676_v3  ;;  %v4653_v16 = vcombine.low %v661_v4, %v677_v5  ;;  %v4368_v2 = vcombine.high %v374_v60, %v390_v61  ;;  %v406_v4 = vld [vmem:[#allocation5 + $0x730] sm:$0xff] }
  0xf8   : > { %v4178_v18 = vcombine.high %v183_v13, %v199_v14  ;;  %v422_v5 = vld [vmem:[#allocation5 + $0x7b0] sm:$0xff] }
  0xfa   : > { %3436 = vmatpush1.bf16.msra.mxu0 %v4427_v21  ;;  %3477 = vmatpush1.bf16.msra.mxu1 %v4429_v22  ;;  %v215_v21 = vld [vmem:[#allocation5 + $0x138] sm:$0xff] }
  0xfb   : > { %3437 = vmatprep.subr.bf16.mxu0 %v4460_v53  ;;  %3478 = vmatprep.subr.bf16.mxu1 %v4462_v23  ;;  %v231_v22 = vld [vmem:[#allocation5 + $0x1b8] sm:$0xff]  ;;  %v4175_v53 = vcombine.low %v182_v10, %v198_v11  ;;  %v4177_v23 = vcombine.low %v183_v13, %v199_v14  ;;  %v4400_v10 = vcombine.high %v406_v4, %v422_v5  ;;  %v438_v13 = vld [vmem:[#allocation5 + $0x830] sm:$0xff] }
  0xfc   : > { %v4210_v25 = vcombine.high %v215_v21, %v231_v22  ;;  %v454_v14 = vld [vmem:[#allocation5 + $0x8b0] sm:$0xff] }
  0xfe   : > { %3438 = vmatpush1.bf16.msra.mxu0 %v4459_v28  ;;  %3479 = vmatpush1.bf16.msra.mxu1 %v4461_v29  ;;  %v247_v28 = vld [vmem:[#allocation5 + $0x238] sm:$0xff] }
  0xff   : > { %3439 = vmatprep.subr.bf16.mxu0 %v4492_v30  ;;  %3480 = vmatprep.subr.bf16.mxu1 %v4494_v31  ;;  %v263_v29 = vld [vmem:[#allocation5 + $0x2b8] sm:$0xff]  ;;  %v4207_v30 = vcombine.low %v214_v19, %v230_v20  ;;  %v4209_v31 = vcombine.low %v215_v21, %v231_v22  ;;  %v4432_v19 = vcombine.high %v438_v13, %v454_v14  ;;  %v470_v21 = vld [vmem:[#allocation5 + $0x930] sm:$0xff] }
 0x100   : > { %v4242_v33 = vcombine.high %v247_v28, %v263_v29  ;;  %v486_v22 = vld [vmem:[#allocation5 + $0x9b0] sm:$0xff] }
 0x102   : > { %3440 = vmatpush1.bf16.msra.mxu0 %v4491_v36  ;;  %3481 = vmatpush1.bf16.msra.mxu1 %v4493_v37  ;;  %v279_v36 = vld [vmem:[#allocation5 + $0x338] sm:$0xff] }
 0x103   : > { %3441 = vmatprep.subr.bf16.mxu0 %v4524_v38  ;;  %3482 = vmatprep.subr.bf16.mxu1 %v4526_v39  ;;  %v295_v37 = vld [vmem:[#allocation5 + $0x3b8] sm:$0xff]  ;;  %v4239_v38 = vcombine.low %v246_v26, %v262_v27  ;;  %v4241_v39 = vcombine.low %v247_v28, %v263_v29  ;;  %v4464_v26 = vcombine.high %v470_v21, %v486_v22  ;;  %v502_v28 = vld [vmem:[#allocation5 + $0xa30] sm:$0xff] }
 0x104   : > { %v4274_v41 = vcombine.high %v279_v36, %v295_v37  ;;  %v518_v29 = vld [vmem:[#allocation5 + $0xab0] sm:$0xff] }
 0x106   : > { %3442 = vmatpush1.bf16.msra.mxu0 %v4523_v44  ;;  %3483 = vmatpush1.bf16.msra.mxu1 %v4525_v45  ;;  %v311_v44 = vld [vmem:[#allocation5 + $0x438] sm:$0xff] }
 0x107   : > { %3443 = vmatprep.subr.bf16.mxu0 %v4556_v46  ;;  %3484 = vmatprep.subr.bf16.mxu1 %v4558_v47  ;;  %v327_v45 = vld [vmem:[#allocation5 + $0x4b8] sm:$0xff]  ;;  %v4271_v46 = vcombine.low %v278_v34, %v294_v35  ;;  %v4273_v47 = vcombine.low %v279_v36, %v295_v37  ;;  %v4496_v34 = vcombine.high %v502_v28, %v518_v29  ;;  %v534_v36 = vld [vmem:[#allocation5 + $0xb30] sm:$0xff] }
 0x108   : > { %v4306_v49 = vcombine.high %v311_v44, %v327_v45  ;;  %v550_v37 = vld [vmem:[#allocation5 + $0xbb0] sm:$0xff] }
 0x10a   : > { %3444 = vmatpush1.bf16.msra.mxu0 %v4555_v52  ;;  %3485 = vmatpush1.bf16.msra.mxu1 %v4557_v54  ;;  %v343_v52 = vld [vmem:[#allocation5 + $0x538] sm:$0xff] }
 0x10b   : > { %3445 = vmatprep.subr.bf16.mxu0 %v4588_v55  ;;  %3486 = vmatprep.subr.bf16.mxu1 %v4590_v56  ;;  %v359_v54 = vld [vmem:[#allocation5 + $0x5b8] sm:$0xff]  ;;  %v4303_v55 = vcombine.low %v310_v42, %v326_v43  ;;  %v4305_v56 = vcombine.low %v311_v44, %v327_v45  ;;  %v4528_v42 = vcombine.high %v534_v36, %v550_v37  ;;  %v566_v44 = vld [vmem:[#allocation5 + $0xc30] sm:$0xff] }
 0x10c   : > { %v4338_v59 = vcombine.high %v343_v52, %v359_v54  ;;  %v582_v45 = vld [vmem:[#allocation5 + $0xcb0] sm:$0xff] }
 0x10e   : > { %3446 = vmatpush1.bf16.msra.mxu0 %v4587_v62  ;;  %3487 = vmatpush1.bf16.msra.mxu1 %v4589_v63  ;;  %v375_v62 = vld [vmem:[#allocation5 + $0x638] sm:$0xff] }
 0x10f   : > { %3447 = vmatprep.subr.bf16.mxu0 %v4620_v0  ;;  %3488 = vmatprep.subr.bf16.mxu1 %v4622_v1  ;;  %v391_v63 = vld [vmem:[#allocation5 + $0x6b8] sm:$0xff]  ;;  %v4335_v0 = vcombine.low %v342_v50, %v358_v51  ;;  %v4337_v1 = vcombine.low %v343_v52, %v359_v54  ;;  %v4560_v50 = vcombine.high %v566_v44, %v582_v45  ;;  %v598_v52 = vld [vmem:[#allocation5 + $0xd30] sm:$0xff] }
 0x110   : > { %v4370_v3 = vcombine.high %v375_v62, %v391_v63  ;;  %v614_v54 = vld [vmem:[#allocation5 + $0xdb0] sm:$0xff] }
 0x112   : > { %3448 = vmatpush1.bf16.msra.mxu0 %v4619_v6  ;;  %3489 = vmatpush1.bf16.msra.mxu1 %v4621_v7  ;;  %v407_v6 = vld [vmem:[#allocation5 + $0x738] sm:$0xff] }
 0x113   : > { %3449 = vmatprep.subr.bf16.mxu0 %v4652_v8  ;;  %3490 = vmatprep.subr.bf16.mxu1 %v4654_v9  ;;  %v423_v7 = vld [vmem:[#allocation5 + $0x7b8] sm:$0xff]  ;;  %v4367_v8 = vcombine.low %v374_v60, %v390_v61  ;;  %v4369_v9 = vcombine.low %v375_v62, %v391_v63  ;;  %v4592_v60 = vcombine.high %v598_v52, %v614_v54  ;;  %v630_v62 = vld [vmem:[#allocation5 + $0xe30] sm:$0xff] }
 0x114   : > { %v4402_v11 = vcombine.high %v407_v6, %v423_v7  ;;  %v646_v63 = vld [vmem:[#allocation5 + $0xeb0] sm:$0xff] }
 0x116   : > { %3450 = vmatpush1.bf16.msra.mxu0 %v4651_v15  ;;  %3491 = vmatpush1.bf16.msra.mxu1 %v4653_v16  ;;  %v439_v15 = vld [vmem:[#allocation5 + $0x838] sm:$0xff] }
 0x117   : > { %3501 = vmatprep.subr.bf16.mxu0 %v4176_v17  ;;  %3542 = vmatprep.subr.bf16.mxu1 %v4178_v18  ;;  %v455_v16 = vld [vmem:[#allocation5 + $0x8b8] sm:$0xff]  ;;  %v4399_v17 = vcombine.low %v406_v4, %v422_v5  ;;  %v4401_v18 = vcombine.low %v407_v6, %v423_v7  ;;  %v4624_v4 = vcombine.high %v630_v62, %v646_v63  ;;  %v662_v6 = vld [vmem:[#allocation5 + $0xf30] sm:$0xff] }
 0x118   : > { %v4434_v20 = vcombine.high %v439_v15, %v455_v16  ;;  %v678_v7 = vld [vmem:[#allocation5 + $0xfb0] sm:$0xff] }
 0x119   : > { %3452 = vmatmul.mubr.bf16.vlgmr.msra.gmra.mrb[8].mxu0 %v5086_v12  ;;  %3493 = vmatmul.mubr.bf16.vlgmr.msra.gmra.mrb[8].mxu1 %v5086_v12 }
 0x11a   : > { %3502 = vmatpush1.bf16.msra.mxu0 %v4175_v53  ;;  %3543 = vmatpush1.bf16.msra.mxu1 %v4177_v23  ;;  %v471_v53 = vld [vmem:[#allocation5 + $0x938] sm:$0xff] }
 0x11b   : > { %3503 = vmatprep.subr.bf16.mxu0 %v4208_v24  ;;  %3544 = vmatprep.subr.bf16.mxu1 %v4210_v25  ;;  %v487_v23 = vld [vmem:[#allocation5 + $0x9b8] sm:$0xff]  ;;  %v4431_v24 = vcombine.low %v438_v13, %v454_v14  ;;  %v4433_v25 = vcombine.low %v439_v15, %v455_v16  ;;  %v4656_v13 = vcombine.high %v662_v6, %v678_v7  ;;  %v184_v15 = vld [vmem:[#allocation5 + $0x40] sm:$0xff] }
 0x11c   : > { %3533 = vmatprep.mubr.bf16.mxu0 %v5080_v57  ;;  %3574 = vmatprep.mubr.bf16.mxu1 %v5080_v57  ;;  %v4466_v27 = vcombine.high %v471_v53, %v487_v23  ;;  %v200_v16 = vld [vmem:[#allocation5 + $0xc0] sm:$0xff] }
 0x11e   : > { %3504 = vmatpush1.bf16.msra.mxu0 %v4207_v30  ;;  %3545 = vmatpush1.bf16.msra.mxu1 %v4209_v31  ;;  %v503_v30 = vld [vmem:[#allocation5 + $0xa38] sm:$0xff] }
 0x11f   : > { %3505 = vmatprep.subr.bf16.mxu0 %v4240_v32  ;;  %3546 = vmatprep.subr.bf16.mxu1 %v4242_v33  ;;  %v519_v31 = vld [vmem:[#allocation5 + $0xab8] sm:$0xff]  ;;  %v4463_v32 = vcombine.low %v470_v21, %v486_v22  ;;  %v4465_v33 = vcombine.low %v471_v53, %v487_v23  ;;  %v4180_v21 = vcombine.high %v184_v15, %v200_v16  ;;  %v216_v53 = vld [vmem:[#allocation5 + $0x140] sm:$0xff] }
 0x120   : > { %v4498_v35 = vcombine.high %v503_v30, %v519_v31  ;;  %v232_v23 = vld [vmem:[#allocation5 + $0x1c0] sm:$0xff] }
 0x122   : > { %3506 = vmatpush1.bf16.msra.mxu0 %v4239_v38  ;;  %3547 = vmatpush1.bf16.msra.mxu1 %v4241_v39  ;;  %v535_v38 = vld [vmem:[#allocation5 + $0xb38] sm:$0xff] }
 0x123   : > { %3507 = vmatprep.subr.bf16.mxu0 %v4272_v40  ;;  %3548 = vmatprep.subr.bf16.mxu1 %v4274_v41  ;;  %v551_v39 = vld [vmem:[#allocation5 + $0xbb8] sm:$0xff]  ;;  %v4495_v40 = vcombine.low %v502_v28, %v518_v29  ;;  %v4497_v41 = vcombine.low %v503_v30, %v519_v31  ;;  %v4212_v28 = vcombine.high %v216_v53, %v232_v23  ;;  %v248_v30 = vld [vmem:[#allocation5 + $0x240] sm:$0xff] }
 0x124   : > { %v4530_v43 = vcombine.high %v535_v38, %v551_v39  ;;  %v264_v31 = vld [vmem:[#allocation5 + $0x2c0] sm:$0xff] }
 0x126   : > { %3508 = vmatpush1.bf16.msra.mxu0 %v4271_v46  ;;  %3549 = vmatpush1.bf16.msra.mxu1 %v4273_v47  ;;  %v567_v46 = vld [vmem:[#allocation5 + $0xc38] sm:$0xff] }
 0x127   : > { %3509 = vmatprep.subr.bf16.mxu0 %v4304_v48  ;;  %3550 = vmatprep.subr.bf16.mxu1 %v4306_v49  ;;  %v583_v47 = vld [vmem:[#allocation5 + $0xcb8] sm:$0xff]  ;;  %v4527_v48 = vcombine.low %v534_v36, %v550_v37  ;;  %v4529_v49 = vcombine.low %v535_v38, %v551_v39  ;;  %v4244_v36 = vcombine.high %v248_v30, %v264_v31  ;;  %v280_v38 = vld [vmem:[#allocation5 + $0x340] sm:$0xff] }
 0x128   : > { %v4562_v51 = vcombine.high %v567_v46, %v583_v47  ;;  %v296_v39 = vld [vmem:[#allocation5 + $0x3c0] sm:$0xff] }
 0x12a   : > { %3510 = vmatpush1.bf16.msra.mxu0 %v4303_v55  ;;  %3551 = vmatpush1.bf16.msra.mxu1 %v4305_v56  ;;  %v599_v55 = vld [vmem:[#allocation5 + $0xd38] sm:$0xff] }
 0x12b   : > { %3511 = vmatprep.subr.bf16.mxu0 %v4336_v58  ;;  %3552 = vmatprep.subr.bf16.mxu1 %v4338_v59  ;;  %v615_v56 = vld [vmem:[#allocation5 + $0xdb8] sm:$0xff]  ;;  %v4559_v58 = vcombine.low %v566_v44, %v582_v45  ;;  %v4561_v59 = vcombine.low %v567_v46, %v583_v47  ;;  %v4276_v44 = vcombine.high %v280_v38, %v296_v39  ;;  %v312_v46 = vld [vmem:[#allocation5 + $0x440] sm:$0xff] }
 0x12c   : > { %v4594_v61 = vcombine.high %v599_v55, %v615_v56  ;;  %v328_v47 = vld [vmem:[#allocation5 + $0x4c0] sm:$0xff] }
 0x12e   : > { %3512 = vmatpush1.bf16.msra.mxu0 %v4335_v0  ;;  %3553 = vmatpush1.bf16.msra.mxu1 %v4337_v1  ;;  %v631_v0 = vld [vmem:[#allocation5 + $0xe38] sm:$0xff] }
 0x12f   : > { %3513 = vmatprep.subr.bf16.mxu0 %v4368_v2  ;;  %3554 = vmatprep.subr.bf16.mxu1 %v4370_v3  ;;  %v647_v1 = vld [vmem:[#allocation5 + $0xeb8] sm:$0xff]  ;;  %v4591_v2 = vcombine.low %v598_v52, %v614_v54  ;;  %v4593_v3 = vcombine.low %v599_v55, %v615_v56  ;;  %v4308_v52 = vcombine.high %v312_v46, %v328_v47  ;;  %v344_v55 = vld [vmem:[#allocation5 + $0x540] sm:$0xff] }
 0x130   : > { %v4626_v5 = vcombine.high %v631_v0, %v647_v1  ;;  %v360_v56 = vld [vmem:[#allocation5 + $0x5c0] sm:$0xff] }
 0x132   : > { %3514 = vmatpush1.bf16.msra.mxu0 %v4367_v8  ;;  %3555 = vmatpush1.bf16.msra.mxu1 %v4369_v9  ;;  %v663_v8 = vld [vmem:[#allocation5 + $0xf38] sm:$0xff] }
 0x133   : > { %3515 = vmatprep.subr.bf16.mxu0 %v4400_v10  ;;  %3556 = vmatprep.subr.bf16.mxu1 %v4402_v11  ;;  %v679_v9 = vld [vmem:[#allocation5 + $0xfb8] sm:$0xff]  ;;  %v4623_v10 = vcombine.low %v630_v62, %v646_v63  ;;  %v4625_v11 = vcombine.low %v631_v0, %v647_v1  ;;  %v4340_v62 = vcombine.high %v344_v55, %v360_v56  ;;  %v376_v0 = vld [vmem:[#allocation5 + $0x640] sm:$0xff] }
 0x134   : > { %v4658_v14 = vcombine.high %v663_v8, %v679_v9  ;;  %v392_v1 = vld [vmem:[#allocation5 + $0x6c0] sm:$0xff] }
 0x136   : > { %3516 = vmatpush1.bf16.msra.mxu0 %v4399_v17  ;;  %3557 = vmatpush1.bf16.msra.mxu1 %v4401_v18  ;;  %v185_v17 = vld [vmem:[#allocation5 + $0x48] sm:$0xff] }
 0x137   : > { %3517 = vmatprep.subr.bf16.mxu0 %v4432_v19  ;;  %3558 = vmatprep.subr.bf16.mxu1 %v4434_v20  ;;  %v201_v18 = vld [vmem:[#allocation5 + $0xc8] sm:$0xff]  ;;  %v4655_v19 = vcombine.low %v662_v6, %v678_v7  ;;  %v4657_v20 = vcombine.low %v663_v8, %v679_v9  ;;  %v4372_v6 = vcombine.high %v376_v0, %v392_v1  ;;  %v408_v9 = vld [vmem:[#allocation5 + $0x740] sm:$0xff] }
 0x138   : > { %v4182_v22 = vcombine.high %v185_v17, %v201_v18 }
 0x13a   : > { %3518 = vmatpush1.bf16.msra.mxu0 %v4431_v24  ;;  %3559 = vmatpush1.bf16.msra.mxu1 %v4433_v25  ;;  %v217_v24 = vld [vmem:[#allocation5 + $0x148] sm:$0xff] }
 0x13b   : > { %3519 = vmatprep.subr.bf16.mxu0 %v4464_v26  ;;  %3560 = vmatprep.subr.bf16.mxu1 %v4466_v27  ;;  %v233_v25 = vld [vmem:[#allocation5 + $0x1c8] sm:$0xff]  ;;  %v4179_v26 = vcombine.low %v184_v15, %v200_v16  ;;  %v4181_v27 = vcombine.low %v185_v17, %v201_v18 }
 0x13c   : > { %v4214_v29 = vcombine.high %v217_v24, %v233_v25  ;;  %v425_v15 = vld [vmem:[#allocation5 + $0x7c8] sm:$0xff] }
 0x13e   : > { %3520 = vmatpush1.bf16.msra.mxu0 %v4463_v32  ;;  %3561 = vmatpush1.bf16.msra.mxu1 %v4465_v33  ;;  %v249_v32 = vld [vmem:[#allocation5 + $0x248] sm:$0xff] }
 0x13f   : > { %3521 = vmatprep.subr.bf16.mxu0 %v4496_v34  ;;  %3562 = vmatprep.subr.bf16.mxu1 %v4498_v35  ;;  %v265_v33 = vld [vmem:[#allocation5 + $0x2c8] sm:$0xff]  ;;  %v4211_v34 = vcombine.low %v216_v53, %v232_v23  ;;  %v4213_v35 = vcombine.low %v217_v24, %v233_v25 }
 0x140   : > { %v4246_v37 = vcombine.high %v249_v32, %v265_v33 }
 0x142   : > { %3522 = vmatpush1.bf16.msra.mxu0 %v4495_v40  ;;  %3563 = vmatpush1.bf16.msra.mxu1 %v4497_v41  ;;  %v281_v40 = vld [vmem:[#allocation5 + $0x348] sm:$0xff] }
 0x143   : > { %3523 = vmatprep.subr.bf16.mxu0 %v4528_v42  ;;  %3564 = vmatprep.subr.bf16.mxu1 %v4530_v43  ;;  %v297_v41 = vld [vmem:[#allocation5 + $0x3c8] sm:$0xff]  ;;  %v4243_v42 = vcombine.low %v248_v30, %v264_v31  ;;  %v4245_v43 = vcombine.low %v249_v32, %v265_v33 }
 0x144   : > { %v4278_v45 = vcombine.high %v281_v40, %v297_v41 }
 0x146   : > { %3524 = vmatpush1.bf16.msra.mxu0 %v4527_v48  ;;  %3565 = vmatpush1.bf16.msra.mxu1 %v4529_v49  ;;  %v313_v48 = vld [vmem:[#allocation5 + $0x448] sm:$0xff] }
 0x147   : > { %3525 = vmatprep.subr.bf16.mxu0 %v4560_v50  ;;  %3566 = vmatprep.subr.bf16.mxu1 %v4562_v51  ;;  %v329_v49 = vld [vmem:[#allocation5 + $0x4c8] sm:$0xff]  ;;  %v4275_v50 = vcombine.low %v280_v38, %v296_v39  ;;  %v4277_v51 = vcombine.low %v281_v40, %v297_v41 }
 0x148   : > { %v4310_v54 = vcombine.high %v313_v48, %v329_v49 }
 0x14a   : > { %3526 = vmatpush1.bf16.msra.mxu0 %v4559_v58  ;;  %3567 = vmatpush1.bf16.msra.mxu1 %v4561_v59  ;;  %v345_v58 = vld [vmem:[#allocation5 + $0x548] sm:$0xff] }
 0x14b   : > { %3527 = vmatprep.subr.bf16.mxu0 %v4592_v60  ;;  %3568 = vmatprep.subr.bf16.mxu1 %v4594_v61  ;;  %v361_v59 = vld [vmem:[#allocation5 + $0x5c8] sm:$0xff]  ;;  %v4307_v60 = vcombine.low %v312_v46, %v328_v47  ;;  %v4309_v61 = vcombine.low %v313_v48, %v329_v49 }
 0x14c   : > { %v4342_v63 = vcombine.high %v345_v58, %v361_v59 }
 0x14e   : > { %3528 = vmatpush1.bf16.msra.mxu0 %v4591_v2  ;;  %3569 = vmatpush1.bf16.msra.mxu1 %v4593_v3  ;;  %v377_v2 = vld [vmem:[#allocation5 + $0x648] sm:$0xff] }
 0x14f   : > { %3529 = vmatprep.subr.bf16.mxu0 %v4624_v4  ;;  %3570 = vmatprep.subr.bf16.mxu1 %v4626_v5  ;;  %v393_v3 = vld [vmem:[#allocation5 + $0x6c8] sm:$0xff]  ;;  %v4339_v4 = vcombine.low %v344_v55, %v360_v56  ;;  %v4341_v5 = vcombine.low %v345_v58, %v361_v59 }
 0x150   : > { %v4374_v8 = vcombine.high %v377_v2, %v393_v3  ;;  %v4373_v53 = vcombine.low %v377_v2, %v393_v3 }
 0x152   : > { %3530 = vmatpush1.bf16.msra.mxu0 %v4623_v10  ;;  %3571 = vmatpush1.bf16.msra.mxu1 %v4625_v11  ;;  %v424_v10 = vld [vmem:[#allocation5 + $0x7c0] sm:$0xff] }
 0x153   : > { %3531 = vmatprep.subr.bf16.mxu0 %v4656_v13  ;;  %3572 = vmatprep.subr.bf16.mxu1 %v4658_v14  ;;  %v409_v14 = vld [vmem:[#allocation5 + $0x748] sm:$0xff]  ;;  %v4404_v23 = vcombine.high %v408_v9, %v424_v10  ;;  %v4403_v30 = vcombine.low %v408_v9, %v424_v10 }
 0x154   : > { %v4406_v25 = vcombine.high %v409_v14, %v425_v15  ;;  %v4405_v31 = vcombine.low %v409_v14, %v425_v15  ;;  %v648_v14 = vld [vmem:[#allocation5 + $0xec0] sm:$0xff]  ;;  %v633_v15 = vld [vmem:[#allocation5 + $0xe48] sm:$0xff] }
 0x156   : > { %3532 = vmatpush1.bf16.msra.mxu0 %v4655_v19  ;;  %3573 = vmatpush1.bf16.msra.mxu1 %v4657_v20  ;;  %v4371_v19 = vcombine.low %v376_v0, %v392_v1 }
 0x157   : > { %3583 = vmatprep.subr.bf16.mxu0 %v4180_v21  ;;  %3624 = vmatprep.subr.bf16.mxu1 %v4182_v22 }
 0x159   : > { %3534 = vmatmul.mubr.bf16.vlgmr.msra.gmra.mrb[12].mxu0 %v5086_v12  ;;  %3575 = vmatmul.mubr.bf16.vlgmr.msra.gmra.mrb[12].mxu1 %v5086_v12 }
 0x15a   : > { %3584 = vmatpush1.bf16.msra.mxu0 %v4179_v26  ;;  %3625 = vmatpush1.bf16.msra.mxu1 %v4181_v27  ;;  %v440_v26 = vld [vmem:[#allocation5 + $0x840] sm:$0xff] }
 0x15b   : > { %3585 = vmatprep.subr.bf16.mxu0 %v4212_v28  ;;  %3626 = vmatprep.subr.bf16.mxu1 %v4214_v29  ;;  %v456_v27 = vld [vmem:[#allocation5 + $0x8c0] sm:$0xff]  ;;  %v441_v28 = vld [vmem:[#allocation5 + $0x848] sm:$0xff] }
 0x15c   : > { %3615 = vmatprep.mubr.bf16.mxu0 %v5080_v57  ;;  %3656 = vmatprep.mubr.bf16.mxu1 %v5080_v57  ;;  %v457_v29 = vld [vmem:[#allocation5 + $0x8c8] sm:$0xff]  ;;  %v4436_v32 = vcombine.high %v440_v26, %v456_v27  ;;  %v4435_v38 = vcombine.low %v440_v26, %v456_v27 }
 0x15d   : > { %v4438_v33 = vcombine.high %v441_v28, %v457_v29  ;;  %v4437_v39 = vcombine.low %v441_v28, %v457_v29  ;;  %v186_v28 = vld [vmem:[#allocation5 + $0x50] sm:$0xff] }
 0x15e   : > { %3586 = vmatpush1.bf16.msra.mxu0 %v4211_v34  ;;  %3627 = vmatpush1.bf16.msra.mxu1 %v4213_v35  ;;  %v472_v34 = vld [vmem:[#allocation5 + $0x940] sm:$0xff]  ;;  %v202_v29 = vld [vmem:[#allocation5 + $0xd0] sm:$0xff] }
 0x15f   : > { %3587 = vmatprep.subr.bf16.mxu0 %v4244_v36  ;;  %3628 = vmatprep.subr.bf16.mxu1 %v4246_v37  ;;  %v488_v35 = vld [vmem:[#allocation5 + $0x9c0] sm:$0xff]  ;;  %v473_v36 = vld [vmem:[#allocation5 + $0x948] sm:$0xff] }
 0x160   : > { %v489_v37 = vld [vmem:[#allocation5 + $0x9c8] sm:$0xff]  ;;  %v4468_v40 = vcombine.high %v472_v34, %v488_v35  ;;  %v4467_v46 = vcombine.low %v472_v34, %v488_v35  ;;  %v4184_v34 = vcombine.high %v186_v28, %v202_v29 }
 0x161   : > { %v4470_v41 = vcombine.high %v473_v36, %v489_v37  ;;  %v4469_v47 = vcombine.low %v473_v36, %v489_v37  ;;  %v218_v36 = vld [vmem:[#allocation5 + $0x150] sm:$0xff] }
 0x162   : > { %3588 = vmatpush1.bf16.msra.mxu0 %v4243_v42  ;;  %3629 = vmatpush1.bf16.msra.mxu1 %v4245_v43  ;;  %v504_v42 = vld [vmem:[#allocation5 + $0xa40] sm:$0xff]  ;;  %v234_v37 = vld [vmem:[#allocation5 + $0x1d0] sm:$0xff] }
 0x163   : > { %3589 = vmatprep.subr.bf16.mxu0 %v4276_v44  ;;  %3630 = vmatprep.subr.bf16.mxu1 %v4278_v45  ;;  %v520_v43 = vld [vmem:[#allocation5 + $0xac0] sm:$0xff]  ;;  %v505_v44 = vld [vmem:[#allocation5 + $0xa48] sm:$0xff] }
 0x164   : > { %v521_v45 = vld [vmem:[#allocation5 + $0xac8] sm:$0xff]  ;;  %v4500_v48 = vcombine.high %v504_v42, %v520_v43  ;;  %v4499_v55 = vcombine.low %v504_v42, %v520_v43  ;;  %v4216_v42 = vcombine.high %v218_v36, %v234_v37 }
 0x165   : > { %v4502_v49 = vcombine.high %v505_v44, %v521_v45  ;;  %v4501_v56 = vcombine.low %v505_v44, %v521_v45  ;;  %v250_v44 = vld [vmem:[#allocation5 + $0x250] sm:$0xff] }
 0x166   : > { %3590 = vmatpush1.bf16.msra.mxu0 %v4275_v50  ;;  %3631 = vmatpush1.bf16.msra.mxu1 %v4277_v51  ;;  %v536_v50 = vld [vmem:[#allocation5 + $0xb40] sm:$0xff]  ;;  %v266_v45 = vld [vmem:[#allocation5 + $0x2d0] sm:$0xff] }
 0x167   : > { %3591 = vmatprep.subr.bf16.mxu0 %v4308_v52  ;;  %3632 = vmatprep.subr.bf16.mxu1 %v4310_v54  ;;  %v552_v51 = vld [vmem:[#allocation5 + $0xbc0] sm:$0xff]  ;;  %v537_v52 = vld [vmem:[#allocation5 + $0xb48] sm:$0xff] }
 0x168   : > { %v553_v54 = vld [vmem:[#allocation5 + $0xbc8] sm:$0xff]  ;;  %v4532_v58 = vcombine.high %v536_v50, %v552_v51  ;;  %v4531_v0 = vcombine.low %v536_v50, %v552_v51  ;;  %v4248_v50 = vcombine.high %v250_v44, %v266_v45 }
 0x169   : > { %v4534_v59 = vcombine.high %v537_v52, %v553_v54  ;;  %v4533_v1 = vcombine.low %v537_v52, %v553_v54  ;;  %v282_v52 = vld [vmem:[#allocation5 + $0x350] sm:$0xff] }
 0x16a   : > { %3592 = vmatpush1.bf16.msra.mxu0 %v4307_v60  ;;  %3633 = vmatpush1.bf16.msra.mxu1 %v4309_v61  ;;  %v568_v60 = vld [vmem:[#allocation5 + $0xc40] sm:$0xff]  ;;  %v298_v54 = vld [vmem:[#allocation5 + $0x3d0] sm:$0xff] }
 0x16b   : > { %3593 = vmatprep.subr.bf16.mxu0 %v4340_v62  ;;  %3634 = vmatprep.subr.bf16.mxu1 %v4342_v63  ;;  %v584_v61 = vld [vmem:[#allocation5 + $0xcc0] sm:$0xff]  ;;  %v569_v62 = vld [vmem:[#allocation5 + $0xc48] sm:$0xff] }
 0x16c   : > { %v3289_v7 = vpop.f32.mrb[0].mxu0  ;;  %v3330_v11 = vpop.f32.mrb[0].mxu1  ;;  %v585_v63 = vld [vmem:[#allocation5 + $0xcc8] sm:$0xff]  ;;  %v4564_v2 = vcombine.high %v568_v60, %v584_v61 }
 0x16d   : > { %v3291_v13 = vpop.f32.mrb[1].mxu0  ;;  %v3332_v17 = vpop.f32.mrb[1].mxu1  ;;  %v4566_v3 = vcombine.high %v569_v62, %v585_v63  ;;  %v4565_v9 = vcombine.low %v569_v62, %v585_v63  ;;  %v314_v62 = vld [vmem:[#allocation5 + $0x450] sm:$0xff] }
 0x16e   : > { %v4697_v16 = vpack.c.bf16 %v3291_v13, %v3289_v7  ;;  %v3293_v18 = vpop.f32.mrb[2].mxu0  ;;  %3594 = vmatpush1.bf16.msra.mxu0 %v4339_v4  ;;  %v4698_v20 = vpack.c.bf16 %v3332_v17, %v3330_v11  ;;  %v3334_v21 = vpop.f32.mrb[2].mxu1  ;;  %3635 = vmatpush1.bf16.msra.mxu1 %v4341_v5  ;;  %v600_v4 = vld [vmem:[#allocation5 + $0xd40] sm:$0xff]  ;;  %v617_v7 = vld [vmem:[#allocation5 + $0xdc8] sm:$0xff]  ;;  %v330_v63 = vld [vmem:[#allocation5 + $0x4d0] sm:$0xff] }
 0x16f   : > { %v3294_v22 = vpop.f32.mrb[3].mxu0  ;;  %3595 = vmatprep.subr.bf16.mxu0 %v4372_v6  ;;  %v3335_v24 = vpop.f32.mrb[3].mxu1  ;;  %3636 = vmatprep.subr.bf16.mxu1 %v4374_v8  ;;  %v616_v5 = vld [vmem:[#allocation5 + $0xdc0] sm:$0xff]  ;;  %v601_v6 = vld [vmem:[#allocation5 + $0xd48] sm:$0xff]  ;;  %v4563_v8 = vcombine.low %v568_v60, %v584_v61  ;;  %v4280_v60 = vcombine.high %v282_v52, %v298_v54 }
 0x170   : > { %4039 = vst [vmem:[%s5105_s17] sm:$0xff] %v4697_v16  ;;  %4040 = vst [vmem:[%s5105_s17 + $0x8] sm:$0xff] %v4698_v20  ;;  %v4596_v10 = vcombine.high %v600_v4, %v616_v5  ;;  %v4598_v11 = vcombine.high %v601_v6, %v617_v7  ;;  %v632_v13 = vld [vmem:[#allocation5 + $0xe40] sm:$0xff]  ;;  %v649_v16 = vld [vmem:[#allocation5 + $0xec8] sm:$0xff]  ;;  %v4595_v17 = vcombine.low %v600_v4, %v616_v5 }
 0x171   : > { %v4597_v18 = vcombine.low %v601_v6, %v617_v7  ;;  %v4630_v20 = vcombine.high %v633_v15, %v649_v16  ;;  %v664_v21 = vld [vmem:[#allocation5 + $0xf40] sm:$0xff]  ;;  %v4627_v24 = vcombine.low %v632_v13, %v648_v14  ;;  %v4312_v4 = vcombine.high %v314_v62, %v330_v63  ;;  %v346_v6 = vld [vmem:[#allocation5 + $0x550] sm:$0xff] }
 0x172   : > { %3596 = vmatpush1.bf16.msra.mxu0 %v4371_v19  ;;  %3637 = vmatpush1.bf16.msra.mxu1 %v4373_v53  ;;  %v4628_v19 = vcombine.high %v632_v13, %v648_v14  ;;  %v680_v22 = vld [vmem:[#allocation5 + $0xfc0] sm:$0xff]  ;;  %v665_v53 = vld [vmem:[#allocation5 + $0xf48] sm:$0xff]  ;;  %v362_v7 = vld [vmem:[#allocation5 + $0x5d0] sm:$0xff] }
 0x173   : > { %3597 = vmatprep.subr.bf16.mxu0 %v4404_v23  ;;  %3638 = vmatprep.subr.bf16.mxu1 %v4406_v25  ;;  %v681_v23 = vld [vmem:[#allocation5 + $0xfc8] sm:$0xff]  ;;  %v4629_v25 = vcombine.low %v633_v15, %v649_v16  ;;  %v4660_v26 = vcombine.high %v664_v21, %v680_v22  ;;  %v4344_v13 = vcombine.high %v346_v6, %v362_v7  ;;  %v378_v15 = vld [vmem:[#allocation5 + $0x650] sm:$0xff] }
 0x174   : > { %v4662_v27 = vcombine.high %v665_v53, %v681_v23  ;;  %v394_v16 = vld [vmem:[#allocation5 + $0x6d0] sm:$0xff] }
 0x176   : > { %3598 = vmatpush1.bf16.msra.mxu0 %v4403_v30  ;;  %3639 = vmatpush1.bf16.msra.mxu1 %v4405_v31  ;;  %v187_v30 = vld [vmem:[#allocation5 + $0x58] sm:$0xff] }
 0x177   : > { %3599 = vmatprep.subr.bf16.mxu0 %v4436_v32  ;;  %3640 = vmatprep.subr.bf16.mxu1 %v4438_v33  ;;  %v203_v31 = vld [vmem:[#allocation5 + $0xd8] sm:$0xff]  ;;  %v4659_v32 = vcombine.low %v664_v21, %v680_v22  ;;  %v4661_v33 = vcombine.low %v665_v53, %v681_v23  ;;  %v4376_v21 = vcombine.high %v378_v15, %v394_v16  ;;  %v410_v23 = vld [vmem:[#allocation5 + $0x750] sm:$0xff] }
 0x178   : > { %v4186_v35 = vcombine.high %v187_v30, %v203_v31 }
 0x17a   : > { %3600 = vmatpush1.bf16.msra.mxu0 %v4435_v38  ;;  %3641 = vmatpush1.bf16.msra.mxu1 %v4437_v39  ;;  %v219_v38 = vld [vmem:[#allocation5 + $0x158] sm:$0xff] }
 0x17b   : > { %3601 = vmatprep.subr.bf16.mxu0 %v4468_v40  ;;  %3642 = vmatprep.subr.bf16.mxu1 %v4470_v41  ;;  %v235_v39 = vld [vmem:[#allocation5 + $0x1d8] sm:$0xff]  ;;  %v4183_v40 = vcombine.low %v186_v28, %v202_v29  ;;  %v4185_v41 = vcombine.low %v187_v30, %v203_v31 }
 0x17c   : > { %v4218_v43 = vcombine.high %v219_v38, %v235_v39  ;;  %v427_v28 = vld [vmem:[#allocation5 + $0x7d8] sm:$0xff] }
 0x17e   : > { %3602 = vmatpush1.bf16.msra.mxu0 %v4467_v46  ;;  %3643 = vmatpush1.bf16.msra.mxu1 %v4469_v47  ;;  %v251_v46 = vld [vmem:[#allocation5 + $0x258] sm:$0xff] }
 0x17f   : > { %3603 = vmatprep.subr.bf16.mxu0 %v4500_v48  ;;  %3644 = vmatprep.subr.bf16.mxu1 %v4502_v49  ;;  %v267_v47 = vld [vmem:[#allocation5 + $0x2d8] sm:$0xff]  ;;  %v4215_v48 = vcombine.low %v218_v36, %v234_v37  ;;  %v4217_v49 = vcombine.low %v219_v38, %v235_v39 }
 0x180   : > { %v4250_v51 = vcombine.high %v251_v46, %v267_v47 }
 0x182   : > { %3604 = vmatpush1.bf16.msra.mxu0 %v4499_v55  ;;  %3645 = vmatpush1.bf16.msra.mxu1 %v4501_v56  ;;  %v283_v55 = vld [vmem:[#allocation5 + $0x358] sm:$0xff] }
 0x183   : > { %3605 = vmatprep.subr.bf16.mxu0 %v4532_v58  ;;  %3646 = vmatprep.subr.bf16.mxu1 %v4534_v59  ;;  %v299_v56 = vld [vmem:[#allocation5 + $0x3d8] sm:$0xff]  ;;  %v4247_v58 = vcombine.low %v250_v44, %v266_v45  ;;  %v4249_v59 = vcombine.low %v251_v46, %v267_v47 }
 0x184   : > { %v4282_v61 = vcombine.high %v283_v55, %v299_v56 }
 0x186   : > { %3606 = vmatpush1.bf16.msra.mxu0 %v4531_v0  ;;  %3647 = vmatpush1.bf16.msra.mxu1 %v4533_v1  ;;  %v315_v0 = vld [vmem:[#allocation5 + $0x458] sm:$0xff] }
 0x187   : > { %3607 = vmatprep.subr.bf16.mxu0 %v4564_v2  ;;  %3648 = vmatprep.subr.bf16.mxu1 %v4566_v3  ;;  %v331_v1 = vld [vmem:[#allocation5 + $0x4d8] sm:$0xff]  ;;  %v4279_v2 = vcombine.low %v282_v52, %v298_v54  ;;  %v4281_v3 = vcombine.low %v283_v55, %v299_v56 }
 0x188   : > { %v4314_v5 = vcombine.high %v315_v0, %v331_v1 }
 0x18a   : > { %3608 = vmatpush1.bf16.msra.mxu0 %v4563_v8  ;;  %3649 = vmatpush1.bf16.msra.mxu1 %v4565_v9  ;;  %v347_v8 = vld [vmem:[#allocation5 + $0x558] sm:$0xff] }
 0x18b   : > { %3609 = vmatprep.subr.bf16.mxu0 %v4596_v10  ;;  %3650 = vmatprep.subr.bf16.mxu1 %v4598_v11  ;;  %v363_v9 = vld [vmem:[#allocation5 + $0x5d8] sm:$0xff]  ;;  %v4311_v10 = vcombine.low %v314_v62, %v330_v63  ;;  %v4313_v11 = vcombine.low %v315_v0, %v331_v1 }
 0x18c   : > { %v4346_v14 = vcombine.high %v347_v8, %v363_v9 }
 0x18e   : > { %3610 = vmatpush1.bf16.msra.mxu0 %v4595_v17  ;;  %3651 = vmatpush1.bf16.msra.mxu1 %v4597_v18  ;;  %v379_v17 = vld [vmem:[#allocation5 + $0x658] sm:$0xff] }
 0x18f   : > { %3611 = vmatprep.subr.bf16.mxu0 %v4628_v19  ;;  %3652 = vmatprep.subr.bf16.mxu1 %v4630_v20  ;;  %v395_v18 = vld [vmem:[#allocation5 + $0x6d8] sm:$0xff]  ;;  %v4343_v19 = vcombine.low %v346_v6, %v362_v7  ;;  %v4345_v20 = vcombine.low %v347_v8, %v363_v9 }
 0x190   : > { %v4378_v53 = vcombine.high %v379_v17, %v395_v18  ;;  %v4377_v36 = vcombine.low %v379_v17, %v395_v18 }
 0x192   : > { %3612 = vmatpush1.bf16.msra.mxu0 %v4627_v24  ;;  %3653 = vmatpush1.bf16.msra.mxu1 %v4629_v25  ;;  %v426_v24 = vld [vmem:[#allocation5 + $0x7d0] sm:$0xff] }
 0x193   : > { %3613 = vmatprep.subr.bf16.mxu0 %v4660_v26  ;;  %3654 = vmatprep.subr.bf16.mxu1 %v4662_v27  ;;  %v411_v27 = vld [vmem:[#allocation5 + $0x758] sm:$0xff]  ;;  %v4408_v37 = vcombine.high %v410_v23, %v426_v24  ;;  %v4407_v44 = vcombine.low %v410_v23, %v426_v24 }
 0x194   : > { %v4410_v39 = vcombine.high %v411_v27, %v427_v28  ;;  %v4409_v45 = vcombine.low %v411_v27, %v427_v28  ;;  %v650_v27 = vld [vmem:[#allocation5 + $0xed0] sm:$0xff]  ;;  %v635_v28 = vld [vmem:[#allocation5 + $0xe58] sm:$0xff] }
 0x196   : > { %3614 = vmatpush1.bf16.msra.mxu0 %v4659_v32  ;;  %3655 = vmatpush1.bf16.msra.mxu1 %v4661_v33  ;;  %v4375_v32 = vcombine.low %v378_v15, %v394_v16 }
 0x197   : > { %3665 = vmatprep.subr.bf16.mxu0 %v4184_v34  ;;  %3706 = vmatprep.subr.bf16.mxu1 %v4186_v35 }
 0x199   : > { %3616 = vmatmul.mubr.bf16.vlgmr.msra.gmra.mrb[16].mxu0 %v5086_v12  ;;  %3657 = vmatmul.mubr.bf16.vlgmr.msra.gmra.mrb[16].mxu1 %v5086_v12 }
 0x19a   : > { %3666 = vmatpush1.bf16.msra.mxu0 %v4183_v40  ;;  %3707 = vmatpush1.bf16.msra.mxu1 %v4185_v41  ;;  %v442_v40 = vld [vmem:[#allocation5 + $0x850] sm:$0xff] }
 0x19b   : > { %3667 = vmatprep.subr.bf16.mxu0 %v4216_v42  ;;  %3708 = vmatprep.subr.bf16.mxu1 %v4218_v43  ;;  %v458_v41 = vld [vmem:[#allocation5 + $0x8d0] sm:$0xff]  ;;  %v443_v42 = vld [vmem:[#allocation5 + $0x858] sm:$0xff] }
 0x19c   : > { %3697 = vmatprep.mubr.bf16.mxu0 %v5080_v57  ;;  %3738 = vmatprep.mubr.bf16.mxu1 %v5080_v57  ;;  %v459_v43 = vld [vmem:[#allocation5 + $0x8d8] sm:$0xff]  ;;  %v4440_v46 = vcombine.high %v442_v40, %v458_v41  ;;  %v4439_v52 = vcombine.low %v442_v40, %v458_v41 }
 0x19d   : > { %v4442_v47 = vcombine.high %v443_v42, %v459_v43  ;;  %v4441_v54 = vcombine.low %v443_v42, %v459_v43  ;;  %v188_v42 = vld [vmem:[#allocation5 + $0x60] sm:$0xff] }
 0x19e   : > { %3668 = vmatpush1.bf16.msra.mxu0 %v4215_v48  ;;  %3709 = vmatpush1.bf16.msra.mxu1 %v4217_v49  ;;  %v474_v48 = vld [vmem:[#allocation5 + $0x950] sm:$0xff]  ;;  %v204_v43 = vld [vmem:[#allocation5 + $0xe0] sm:$0xff] }
 0x19f   : > { %3669 = vmatprep.subr.bf16.mxu0 %v4248_v50  ;;  %3710 = vmatprep.subr.bf16.mxu1 %v4250_v51  ;;  %v490_v49 = vld [vmem:[#allocation5 + $0x9d0] sm:$0xff]  ;;  %v475_v50 = vld [vmem:[#allocation5 + $0x958] sm:$0xff] }
 0x1a0   : > { %v491_v51 = vld [vmem:[#allocation5 + $0x9d8] sm:$0xff]  ;;  %v4472_v55 = vcombine.high %v474_v48, %v490_v49  ;;  %v4471_v62 = vcombine.low %v474_v48, %v490_v49  ;;  %v4188_v48 = vcombine.high %v188_v42, %v204_v43 }
 0x1a1   : > { %v4474_v56 = vcombine.high %v475_v50, %v491_v51  ;;  %v4473_v63 = vcombine.low %v475_v50, %v491_v51  ;;  %v220_v50 = vld [vmem:[#allocation5 + $0x160] sm:$0xff] }
 0x1a2   : > { %3670 = vmatpush1.bf16.msra.mxu0 %v4247_v58  ;;  %3711 = vmatpush1.bf16.msra.mxu1 %v4249_v59  ;;  %v506_v58 = vld [vmem:[#allocation5 + $0xa50] sm:$0xff]  ;;  %v236_v51 = vld [vmem:[#allocation5 + $0x1e0] sm:$0xff] }
 0x1a3   : > { %3671 = vmatprep.subr.bf16.mxu0 %v4280_v60  ;;  %3712 = vmatprep.subr.bf16.mxu1 %v4282_v61  ;;  %v522_v59 = vld [vmem:[#allocation5 + $0xad0] sm:$0xff]  ;;  %v507_v60 = vld [vmem:[#allocation5 + $0xa58] sm:$0xff] }
 0x1a4   : > { %v523_v61 = vld [vmem:[#allocation5 + $0xad8] sm:$0xff]  ;;  %v4504_v0 = vcombine.high %v506_v58, %v522_v59  ;;  %v4503_v6 = vcombine.low %v506_v58, %v522_v59  ;;  %v4220_v58 = vcombine.high %v220_v50, %v236_v51 }
 0x1a5   : > { %v4506_v1 = vcombine.high %v507_v60, %v523_v61  ;;  %v4505_v7 = vcombine.low %v507_v60, %v523_v61  ;;  %v252_v60 = vld [vmem:[#allocation5 + $0x260] sm:$0xff] }
 0x1a6   : > { %3672 = vmatpush1.bf16.msra.mxu0 %v4279_v2  ;;  %3713 = vmatpush1.bf16.msra.mxu1 %v4281_v3  ;;  %v538_v2 = vld [vmem:[#allocation5 + $0xb50] sm:$0xff]  ;;  %v268_v61 = vld [vmem:[#allocation5 + $0x2e0] sm:$0xff] }
 0x1a7   : > { %3673 = vmatprep.subr.bf16.mxu0 %v4312_v4  ;;  %3714 = vmatprep.subr.bf16.mxu1 %v4314_v5  ;;  %v554_v3 = vld [vmem:[#allocation5 + $0xbd0] sm:$0xff]  ;;  %v539_v4 = vld [vmem:[#allocation5 + $0xb58] sm:$0xff] }
 0x1a8   : > { %v555_v5 = vld [vmem:[#allocation5 + $0xbd8] sm:$0xff]  ;;  %v4536_v8 = vcombine.high %v538_v2, %v554_v3  ;;  %v4535_v15 = vcombine.low %v538_v2, %v554_v3  ;;  %v4252_v2 = vcombine.high %v252_v60, %v268_v61 }
 0x1a9   : > { %v4538_v9 = vcombine.high %v539_v4, %v555_v5  ;;  %v4537_v16 = vcombine.low %v539_v4, %v555_v5  ;;  %v284_v4 = vld [vmem:[#allocation5 + $0x360] sm:$0xff] }
 0x1aa   : > { %3674 = vmatpush1.bf16.msra.mxu0 %v4311_v10  ;;  %3715 = vmatpush1.bf16.msra.mxu1 %v4313_v11  ;;  %v570_v10 = vld [vmem:[#allocation5 + $0xc50] sm:$0xff]  ;;  %v300_v5 = vld [vmem:[#allocation5 + $0x3e0] sm:$0xff] }
 0x1ab   : > { %3675 = vmatprep.subr.bf16.mxu0 %v4344_v13  ;;  %3716 = vmatprep.subr.bf16.mxu1 %v4346_v14  ;;  %v586_v11 = vld [vmem:[#allocation5 + $0xcd0] sm:$0xff]  ;;  %v571_v13 = vld [vmem:[#allocation5 + $0xc58] sm:$0xff] }
 0x1ac   : > { %v3371_v22 = vpop.f32.mrb[4].mxu0  ;;  %v3412_v25 = vpop.f32.mrb[4].mxu1  ;;  %v587_v14 = vld [vmem:[#allocation5 + $0xcd8] sm:$0xff]  ;;  %v4568_v17 = vcombine.high %v570_v10, %v586_v11 }
 0x1ad   : > { %v3373_v26 = vpop.f32.mrb[5].mxu0  ;;  %v3414_v30 = vpop.f32.mrb[5].mxu1  ;;  %v4570_v18 = vcombine.high %v571_v13, %v587_v14  ;;  %v4569_v23 = vcombine.low %v571_v13, %v587_v14  ;;  %v316_v13 = vld [vmem:[#allocation5 + $0x460] sm:$0xff] }
 0x1ae   : > { %v4699_v29 = vpack.c.bf16 %v3373_v26, %v3371_v22  ;;  %v3375_v31 = vpop.f32.mrb[6].mxu0  ;;  %3676 = vmatpush1.bf16.msra.mxu0 %v4343_v19  ;;  %v4700_v33 = vpack.c.bf16 %v3414_v30, %v3412_v25  ;;  %v3416_v34 = vpop.f32.mrb[6].mxu1  ;;  %3717 = vmatpush1.bf16.msra.mxu1 %v4345_v20  ;;  %v602_v19 = vld [vmem:[#allocation5 + $0xd50] sm:$0xff]  ;;  %v619_v22 = vld [vmem:[#allocation5 + $0xdd8] sm:$0xff]  ;;  %v332_v14 = vld [vmem:[#allocation5 + $0x4e0] sm:$0xff] }
 0x1af   : > { %v3376_v35 = vpop.f32.mrb[7].mxu0  ;;  %3677 = vmatprep.subr.bf16.mxu0 %v4376_v21  ;;  %v3417_v38 = vpop.f32.mrb[7].mxu1  ;;  %3718 = vmatprep.subr.bf16.mxu1 %v4378_v53  ;;  %v618_v20 = vld [vmem:[#allocation5 + $0xdd0] sm:$0xff]  ;;  %v603_v21 = vld [vmem:[#allocation5 + $0xd58] sm:$0xff]  ;;  %v4567_v53 = vcombine.low %v570_v10, %v586_v11  ;;  %v4284_v10 = vcombine.high %v284_v4, %v300_v5 }
 0x1b0   : > { %4041 = vst [vmem:[%s5105_s17 + $0x10] sm:$0xff] %v4699_v29  ;;  %4042 = vst [vmem:[%s5105_s17 + $0x18] sm:$0xff] %v4700_v33  ;;  %v4600_v24 = vcombine.high %v602_v19, %v618_v20  ;;  %v4602_v25 = vcombine.high %v603_v21, %v619_v22  ;;  %v634_v26 = vld [vmem:[#allocation5 + $0xe50] sm:$0xff]  ;;  %v651_v29 = vld [vmem:[#allocation5 + $0xed8] sm:$0xff]  ;;  %v4599_v30 = vcombine.low %v602_v19, %v618_v20 }
 0x1b1   : > { %v4601_v31 = vcombine.low %v603_v21, %v619_v22  ;;  %v4634_v33 = vcombine.high %v635_v28, %v651_v29  ;;  %v666_v34 = vld [vmem:[#allocation5 + $0xf50] sm:$0xff]  ;;  %v4631_v38 = vcombine.low %v634_v26, %v650_v27  ;;  %v4316_v19 = vcombine.high %v316_v13, %v332_v14  ;;  %v348_v21 = vld [vmem:[#allocation5 + $0x560] sm:$0xff] }
 0x1b2   : > { %3678 = vmatpush1.bf16.msra.mxu0 %v4375_v32  ;;  %3719 = vmatpush1.bf16.msra.mxu1 %v4377_v36  ;;  %v4632_v32 = vcombine.high %v634_v26, %v650_v27  ;;  %v682_v35 = vld [vmem:[#allocation5 + $0xfd0] sm:$0xff]  ;;  %v667_v36 = vld [vmem:[#allocation5 + $0xf58] sm:$0xff]  ;;  %v364_v22 = vld [vmem:[#allocation5 + $0x5e0] sm:$0xff] }
 0x1b3   : > { %3679 = vmatprep.subr.bf16.mxu0 %v4408_v37  ;;  %3720 = vmatprep.subr.bf16.mxu1 %v4410_v39  ;;  %v683_v37 = vld [vmem:[#allocation5 + $0xfd8] sm:$0xff]  ;;  %v4633_v39 = vcombine.low %v635_v28, %v651_v29  ;;  %v4664_v40 = vcombine.high %v666_v34, %v682_v35  ;;  %v4348_v26 = vcombine.high %v348_v21, %v364_v22  ;;  %v380_v28 = vld [vmem:[#allocation5 + $0x660] sm:$0xff] }
 0x1b4   : > { %v4666_v41 = vcombine.high %v667_v36, %v683_v37  ;;  %v396_v29 = vld [vmem:[#allocation5 + $0x6e0] sm:$0xff] }
 0x1b6   : > { %3680 = vmatpush1.bf16.msra.mxu0 %v4407_v44  ;;  %3721 = vmatpush1.bf16.msra.mxu1 %v4409_v45  ;;  %v189_v44 = vld [vmem:[#allocation5 + $0x68] sm:$0xff] }
 0x1b7   : > { %3681 = vmatprep.subr.bf16.mxu0 %v4440_v46  ;;  %3722 = vmatprep.subr.bf16.mxu1 %v4442_v47  ;;  %v205_v45 = vld [vmem:[#allocation5 + $0xe8] sm:$0xff]  ;;  %v4663_v46 = vcombine.low %v666_v34, %v682_v35  ;;  %v4665_v47 = vcombine.low %v667_v36, %v683_v37  ;;  %v4380_v34 = vcombine.high %v380_v28, %v396_v29  ;;  %v412_v37 = vld [vmem:[#allocation5 + $0x760] sm:$0xff] }
 0x1b8   : > { %v4190_v49 = vcombine.high %v189_v44, %v205_v45 }
 0x1ba   : > { %3682 = vmatpush1.bf16.msra.mxu0 %v4439_v52  ;;  %3723 = vmatpush1.bf16.msra.mxu1 %v4441_v54  ;;  %v221_v52 = vld [vmem:[#allocation5 + $0x168] sm:$0xff] }
 0x1bb   : > { %3683 = vmatprep.subr.bf16.mxu0 %v4472_v55  ;;  %3724 = vmatprep.subr.bf16.mxu1 %v4474_v56  ;;  %v237_v54 = vld [vmem:[#allocation5 + $0x1e8] sm:$0xff]  ;;  %v4187_v55 = vcombine.low %v188_v42, %v204_v43  ;;  %v4189_v56 = vcombine.low %v189_v44, %v205_v45 }
 0x1bc   : > { %v4222_v59 = vcombine.high %v221_v52, %v237_v54  ;;  %v429_v42 = vld [vmem:[#allocation5 + $0x7e8] sm:$0xff] }
 0x1be   : > { %3684 = vmatpush1.bf16.msra.mxu0 %v4471_v62  ;;  %3725 = vmatpush1.bf16.msra.mxu1 %v4473_v63  ;;  %v253_v62 = vld [vmem:[#allocation5 + $0x268] sm:$0xff] }
 0x1bf   : > { %3685 = vmatprep.subr.bf16.mxu0 %v4504_v0  ;;  %3726 = vmatprep.subr.bf16.mxu1 %v4506_v1  ;;  %v269_v63 = vld [vmem:[#allocation5 + $0x2e8] sm:$0xff]  ;;  %v4219_v0 = vcombine.low %v220_v50, %v236_v51  ;;  %v4221_v1 = vcombine.low %v221_v52, %v237_v54 }
 0x1c0   : > { %v4254_v3 = vcombine.high %v253_v62, %v269_v63 }
 0x1c2   : > { %3686 = vmatpush1.bf16.msra.mxu0 %v4503_v6  ;;  %3727 = vmatpush1.bf16.msra.mxu1 %v4505_v7  ;;  %v285_v6 = vld [vmem:[#allocation5 + $0x368] sm:$0xff] }
 0x1c3   : > { %3687 = vmatprep.subr.bf16.mxu0 %v4536_v8  ;;  %3728 = vmatprep.subr.bf16.mxu1 %v4538_v9  ;;  %v301_v7 = vld [vmem:[#allocation5 + $0x3e8] sm:$0xff]  ;;  %v4251_v8 = vcombine.low %v252_v60, %v268_v61  ;;  %v4253_v9 = vcombine.low %v253_v62, %v269_v63 }
 0x1c4   : > { %v4286_v11 = vcombine.high %v285_v6, %v301_v7 }
 0x1c6   : > { %3688 = vmatpush1.bf16.msra.mxu0 %v4535_v15  ;;  %3729 = vmatpush1.bf16.msra.mxu1 %v4537_v16  ;;  %v317_v15 = vld [vmem:[#allocation5 + $0x468] sm:$0xff] }
 0x1c7   : > { %3689 = vmatprep.subr.bf16.mxu0 %v4568_v17  ;;  %3730 = vmatprep.subr.bf16.mxu1 %v4570_v18  ;;  %v333_v16 = vld [vmem:[#allocation5 + $0x4e8] sm:$0xff]  ;;  %v4283_v17 = vcombine.low %v284_v4, %v300_v5  ;;  %v4285_v18 = vcombine.low %v285_v6, %v301_v7 }
 0x1c8   : > { %v4318_v20 = vcombine.high %v317_v15, %v333_v16 }
 0x1ca   : > { %3690 = vmatpush1.bf16.msra.mxu0 %v4567_v53  ;;  %3731 = vmatpush1.bf16.msra.mxu1 %v4569_v23  ;;  %v349_v53 = vld [vmem:[#allocation5 + $0x568] sm:$0xff] }
 0x1cb   : > { %3691 = vmatprep.subr.bf16.mxu0 %v4600_v24  ;;  %3732 = vmatprep.subr.bf16.mxu1 %v4602_v25  ;;  %v365_v23 = vld [vmem:[#allocation5 + $0x5e8] sm:$0xff]  ;;  %v4315_v24 = vcombine.low %v316_v13, %v332_v14  ;;  %v4317_v25 = vcombine.low %v317_v15, %v333_v16 }
 0x1cc   : > { %v4350_v27 = vcombine.high %v349_v53, %v365_v23 }
 0x1ce   : > { %3692 = vmatpush1.bf16.msra.mxu0 %v4599_v30  ;;  %3733 = vmatpush1.bf16.msra.mxu1 %v4601_v31  ;;  %v381_v30 = vld [vmem:[#allocation5 + $0x668] sm:$0xff] }
 0x1cf   : > { %3693 = vmatprep.subr.bf16.mxu0 %v4632_v32  ;;  %3734 = vmatprep.subr.bf16.mxu1 %v4634_v33  ;;  %v397_v31 = vld [vmem:[#allocation5 + $0x6e8] sm:$0xff]  ;;  %v4347_v32 = vcombine.low %v348_v21, %v364_v22  ;;  %v4349_v33 = vcombine.low %v349_v53, %v365_v23 }
 0x1d0   : > { %v4382_v36 = vcombine.high %v381_v30, %v397_v31  ;;  %v4381_v50 = vcombine.low %v381_v30, %v397_v31 }
 0x1d2   : > { %3694 = vmatpush1.bf16.msra.mxu0 %v4631_v38  ;;  %3735 = vmatpush1.bf16.msra.mxu1 %v4633_v39  ;;  %v428_v38 = vld [vmem:[#allocation5 + $0x7e0] sm:$0xff] }
 0x1d3   : > { %3695 = vmatprep.subr.bf16.mxu0 %v4664_v40  ;;  %3736 = vmatprep.subr.bf16.mxu1 %v4666_v41  ;;  %v413_v41 = vld [vmem:[#allocation5 + $0x768] sm:$0xff]  ;;  %v4412_v51 = vcombine.high %v412_v37, %v428_v38  ;;  %v4411_v60 = vcombine.low %v412_v37, %v428_v38 }
 0x1d4   : > { %v4414_v54 = vcombine.high %v413_v41, %v429_v42  ;;  %v4413_v61 = vcombine.low %v413_v41, %v429_v42  ;;  %v652_v41 = vld [vmem:[#allocation5 + $0xee0] sm:$0xff]  ;;  %v637_v42 = vld [vmem:[#allocation5 + $0xe68] sm:$0xff] }
 0x1d6   : > { %3696 = vmatpush1.bf16.msra.mxu0 %v4663_v46  ;;  %3737 = vmatpush1.bf16.msra.mxu1 %v4665_v47  ;;  %v4379_v46 = vcombine.low %v380_v28, %v396_v29 }
 0x1d7   : > { %3747 = vmatprep.subr.bf16.mxu0 %v4188_v48  ;;  %3788 = vmatprep.subr.bf16.mxu1 %v4190_v49 }
 0x1d9   : > { %3698 = vmatmul.mubr.bf16.vlgmr.msra.gmra.mrb[20].mxu0 %v5086_v12  ;;  %3739 = vmatmul.mubr.bf16.vlgmr.msra.gmra.mrb[20].mxu1 %v5086_v12 }
 0x1da   : > { %3748 = vmatpush1.bf16.msra.mxu0 %v4187_v55  ;;  %3789 = vmatpush1.bf16.msra.mxu1 %v4189_v56  ;;  %v444_v55 = vld [vmem:[#allocation5 + $0x860] sm:$0xff] }
 0x1db   : > { %3749 = vmatprep.subr.bf16.mxu0 %v4220_v58  ;;  %3790 = vmatprep.subr.bf16.mxu1 %v4222_v59  ;;  %v460_v56 = vld [vmem:[#allocation5 + $0x8e0] sm:$0xff]  ;;  %v445_v58 = vld [vmem:[#allocation5 + $0x868] sm:$0xff] }
 0x1dc   : > { %3779 = vmatprep.mubr.bf16.mxu0 %v5080_v57  ;;  %3820 = vmatprep.mubr.bf16.mxu1 %v5080_v57  ;;  %v461_v59 = vld [vmem:[#allocation5 + $0x8e8] sm:$0xff]  ;;  %v4444_v62 = vcombine.high %v444_v55, %v460_v56  ;;  %v4443_v4 = vcombine.low %v444_v55, %v460_v56 }
 0x1dd   : > { %v4446_v63 = vcombine.high %v445_v58, %v461_v59  ;;  %v4445_v5 = vcombine.low %v445_v58, %v461_v59  ;;  %v190_v58 = vld [vmem:[#allocation5 + $0x70] sm:$0xff] }
 0x1de   : > { %3750 = vmatpush1.bf16.msra.mxu0 %v4219_v0  ;;  %3791 = vmatpush1.bf16.msra.mxu1 %v4221_v1  ;;  %v476_v0 = vld [vmem:[#allocation5 + $0x960] sm:$0xff]  ;;  %v206_v59 = vld [vmem:[#allocation5 + $0xf0] sm:$0xff] }
 0x1df   : > { %3751 = vmatprep.subr.bf16.mxu0 %v4252_v2  ;;  %3792 = vmatprep.subr.bf16.mxu1 %v4254_v3  ;;  %v492_v1 = vld [vmem:[#allocation5 + $0x9e0] sm:$0xff]  ;;  %v477_v2 = vld [vmem:[#allocation5 + $0x968] sm:$0xff] }
 0x1e0   : > { %v493_v3 = vld [vmem:[#allocation5 + $0x9e8] sm:$0xff]  ;;  %v4476_v6 = vcombine.high %v476_v0, %v492_v1  ;;  %v4475_v13 = vcombine.low %v476_v0, %v492_v1  ;;  %v4192_v0 = vcombine.high %v190_v58, %v206_v59 }
 0x1e1   : > { %v4478_v7 = vcombine.high %v477_v2, %v493_v3  ;;  %v4477_v14 = vcombine.low %v477_v2, %v493_v3  ;;  %v222_v2 = vld [vmem:[#allocation5 + $0x170] sm:$0xff] }
 0x1e2   : > { %3752 = vmatpush1.bf16.msra.mxu0 %v4251_v8  ;;  %3793 = vmatpush1.bf16.msra.mxu1 %v4253_v9  ;;  %v508_v8 = vld [vmem:[#allocation5 + $0xa60] sm:$0xff]  ;;  %v238_v3 = vld [vmem:[#allocation5 + $0x1f0] sm:$0xff] }
 0x1e3   : > { %3753 = vmatprep.subr.bf16.mxu0 %v4284_v10  ;;  %3794 = vmatprep.subr.bf16.mxu1 %v4286_v11  ;;  %v524_v9 = vld [vmem:[#allocation5 + $0xae0] sm:$0xff]  ;;  %v509_v10 = vld [vmem:[#allocation5 + $0xa68] sm:$0xff] }
 0x1e4   : > { %v525_v11 = vld [vmem:[#allocation5 + $0xae8] sm:$0xff]  ;;  %v4508_v15 = vcombine.high %v508_v8, %v524_v9  ;;  %v4507_v21 = vcombine.low %v508_v8, %v524_v9  ;;  %v4224_v8 = vcombine.high %v222_v2, %v238_v3 }
 0x1e5   : > { %v4510_v16 = vcombine.high %v509_v10, %v525_v11  ;;  %v4509_v22 = vcombine.low %v509_v10, %v525_v11  ;;  %v254_v10 = vld [vmem:[#allocation5 + $0x270] sm:$0xff] }
 0x1e6   : > { %3754 = vmatpush1.bf16.msra.mxu0 %v4283_v17  ;;  %3795 = vmatpush1.bf16.msra.mxu1 %v4285_v18  ;;  %v540_v17 = vld [vmem:[#allocation5 + $0xb60] sm:$0xff]  ;;  %v270_v11 = vld [vmem:[#allocation5 + $0x2f0] sm:$0xff] }
 0x1e7   : > { %3755 = vmatprep.subr.bf16.mxu0 %v4316_v19  ;;  %3796 = vmatprep.subr.bf16.mxu1 %v4318_v20  ;;  %v556_v18 = vld [vmem:[#allocation5 + $0xbe0] sm:$0xff]  ;;  %v541_v19 = vld [vmem:[#allocation5 + $0xb68] sm:$0xff] }
 0x1e8   : > { %v557_v20 = vld [vmem:[#allocation5 + $0xbe8] sm:$0xff]  ;;  %v4540_v53 = vcombine.high %v540_v17, %v556_v18  ;;  %v4539_v28 = vcombine.low %v540_v17, %v556_v18  ;;  %v4256_v17 = vcombine.high %v254_v10, %v270_v11 }
 0x1e9   : > { %v4542_v23 = vcombine.high %v541_v19, %v557_v20  ;;  %v4541_v29 = vcombine.low %v541_v19, %v557_v20  ;;  %v286_v19 = vld [vmem:[#allocation5 + $0x370] sm:$0xff] }
 0x1ea   : > { %3756 = vmatpush1.bf16.msra.mxu0 %v4315_v24  ;;  %3797 = vmatpush1.bf16.msra.mxu1 %v4317_v25  ;;  %v572_v24 = vld [vmem:[#allocation5 + $0xc60] sm:$0xff]  ;;  %v302_v20 = vld [vmem:[#allocation5 + $0x3f0] sm:$0xff] }
 0x1eb   : > { %3757 = vmatprep.subr.bf16.mxu0 %v4348_v26  ;;  %3798 = vmatprep.subr.bf16.mxu1 %v4350_v27  ;;  %v588_v25 = vld [vmem:[#allocation5 + $0xce0] sm:$0xff]  ;;  %v573_v26 = vld [vmem:[#allocation5 + $0xc68] sm:$0xff] }
 0x1ec   : > { %v3453_v35 = vpop.f32.mrb[8].mxu0  ;;  %v3494_v39 = vpop.f32.mrb[8].mxu1  ;;  %v589_v27 = vld [vmem:[#allocation5 + $0xce8] sm:$0xff]  ;;  %v4572_v30 = vcombine.high %v572_v24, %v588_v25 }
 0x1ed   : > { %v3455_v40 = vpop.f32.mrb[9].mxu0  ;;  %v3496_v44 = vpop.f32.mrb[9].mxu1  ;;  %v4574_v31 = vcombine.high %v573_v26, %v589_v27  ;;  %v4573_v37 = vcombine.low %v573_v26, %v589_v27  ;;  %v318_v26 = vld [vmem:[#allocation5 + $0x470] sm:$0xff] }
 0x1ee   : > { %v4701_v43 = vpack.c.bf16 %v3455_v40, %v3453_v35  ;;  %v3457_v45 = vpop.f32.mrb[10].mxu0  ;;  %3758 = vmatpush1.bf16.msra.mxu0 %v4347_v32  ;;  %v4702_v47 = vpack.c.bf16 %v3496_v44, %v3494_v39  ;;  %v3498_v48 = vpop.f32.mrb[10].mxu1  ;;  %3799 = vmatpush1.bf16.msra.mxu1 %v4349_v33  ;;  %v604_v32 = vld [vmem:[#allocation5 + $0xd60] sm:$0xff]  ;;  %v621_v35 = vld [vmem:[#allocation5 + $0xde8] sm:$0xff]  ;;  %v334_v27 = vld [vmem:[#allocation5 + $0x4f0] sm:$0xff] }
 0x1ef   : > { %v3458_v49 = vpop.f32.mrb[11].mxu0  ;;  %3759 = vmatprep.subr.bf16.mxu0 %v4380_v34  ;;  %v3499_v52 = vpop.f32.mrb[11].mxu1  ;;  %3800 = vmatprep.subr.bf16.mxu1 %v4382_v36  ;;  %v620_v33 = vld [vmem:[#allocation5 + $0xde0] sm:$0xff]  ;;  %v605_v34 = vld [vmem:[#allocation5 + $0xd68] sm:$0xff]  ;;  %v4571_v36 = vcombine.low %v572_v24, %v588_v25  ;;  %v4288_v24 = vcombine.high %v286_v19, %v302_v20 }
 0x1f0   : > { %4043 = vst [vmem:[%s5105_s17 + $0x20] sm:$0xff] %v4701_v43  ;;  %4044 = vst [vmem:[%s5105_s17 + $0x28] sm:$0xff] %v4702_v47  ;;  %v4604_v38 = vcombine.high %v604_v32, %v620_v33  ;;  %v4606_v39 = vcombine.high %v605_v34, %v621_v35  ;;  %v636_v40 = vld [vmem:[#allocation5 + $0xe60] sm:$0xff]  ;;  %v653_v43 = vld [vmem:[#allocation5 + $0xee8] sm:$0xff]  ;;  %v4603_v44 = vcombine.low %v604_v32, %v620_v33 }
 0x1f1   : > { %v4605_v45 = vcombine.low %v605_v34, %v621_v35  ;;  %v4638_v47 = vcombine.high %v637_v42, %v653_v43  ;;  %v668_v48 = vld [vmem:[#allocation5 + $0xf60] sm:$0xff]  ;;  %v4635_v52 = vcombine.low %v636_v40, %v652_v41  ;;  %v4320_v32 = vcombine.high %v318_v26, %v334_v27  ;;  %v350_v33 = vld [vmem:[#allocation5 + $0x570] sm:$0xff]  ;;  %v351_v35 = vld [vmem:[#allocation5 + $0x578] sm:$0xff] }
 0x1f2   : > { %3760 = vmatpush1.bf16.msra.mxu0 %v4379_v46  ;;  %3801 = vmatpush1.bf16.msra.mxu1 %v4381_v50  ;;  %v4636_v46 = vcombine.high %v636_v40, %v652_v41  ;;  %v684_v49 = vld [vmem:[#allocation5 + $0xfe0] sm:$0xff]  ;;  %v669_v50 = vld [vmem:[#allocation5 + $0xf68] sm:$0xff]  ;;  %v366_v34 = vld [vmem:[#allocation5 + $0x5f0] sm:$0xff] }
 0x1f3   : > { %3761 = vmatprep.subr.bf16.mxu0 %v4412_v51  ;;  %3802 = vmatprep.subr.bf16.mxu1 %v4414_v54  ;;  %v685_v51 = vld [vmem:[#allocation5 + $0xfe8] sm:$0xff]  ;;  %v4637_v54 = vcombine.low %v637_v42, %v653_v43  ;;  %v4668_v55 = vcombine.high %v668_v48, %v684_v49  ;;  %v382_v41 = vld [vmem:[#allocation5 + $0x670] sm:$0xff]  ;;  %v383_v43 = vld [vmem:[#allocation5 + $0x678] sm:$0xff] }
 0x1f4   : > { %v4670_v56 = vcombine.high %v669_v50, %v685_v51  ;;  %v398_v42 = vld [vmem:[#allocation5 + $0x6f0] sm:$0xff] }
 0x1f6   : > { %3762 = vmatpush1.bf16.msra.mxu0 %v4411_v60  ;;  %3803 = vmatpush1.bf16.msra.mxu1 %v4413_v61  ;;  %v191_v60 = vld [vmem:[#allocation5 + $0x78] sm:$0xff] }
 0x1f7   : > { %3763 = vmatprep.subr.bf16.mxu0 %v4444_v62  ;;  %3804 = vmatprep.subr.bf16.mxu1 %v4446_v63  ;;  %v207_v61 = vld [vmem:[#allocation5 + $0xf8] sm:$0xff]  ;;  %v4667_v62 = vcombine.low %v668_v48, %v684_v49  ;;  %v4669_v63 = vcombine.low %v669_v50, %v685_v51  ;;  %v414_v50 = vld [vmem:[#allocation5 + $0x770] sm:$0xff] }
 0x1f8   : > { %v4194_v1 = vcombine.high %v191_v60, %v207_v61  ;;  %v430_v51 = vld [vmem:[#allocation5 + $0x7f0] sm:$0xff] }
 0x1fa   : > { %3764 = vmatpush1.bf16.msra.mxu0 %v4443_v4  ;;  %3805 = vmatpush1.bf16.msra.mxu1 %v4445_v5  ;;  %v223_v4 = vld [vmem:[#allocation5 + $0x178] sm:$0xff] }
 0x1fb   : > { %3765 = vmatprep.subr.bf16.mxu0 %v4476_v6  ;;  %3806 = vmatprep.subr.bf16.mxu1 %v4478_v7  ;;  %v239_v5 = vld [vmem:[#allocation5 + $0x1f8] sm:$0xff]  ;;  %v4191_v6 = vcombine.low %v190_v58, %v206_v59  ;;  %v4193_v7 = vcombine.low %v191_v60, %v207_v61  ;;  %v4383_v61 = vcombine.low %v382_v41, %v398_v42 }
 0x1fc   : > { %v4226_v9 = vcombine.high %v223_v4, %v239_v5 }
 0x1fe   : > { %3766 = vmatpush1.bf16.msra.mxu0 %v4475_v13  ;;  %3807 = vmatpush1.bf16.msra.mxu1 %v4477_v14  ;;  %v255_v13 = vld [vmem:[#allocation5 + $0x278] sm:$0xff] }
 0x1ff   : > { %3767 = vmatprep.subr.bf16.mxu0 %v4508_v15  ;;  %3808 = vmatprep.subr.bf16.mxu1 %v4510_v16  ;;  %v271_v14 = vld [vmem:[#allocation5 + $0x2f8] sm:$0xff]  ;;  %v4223_v15 = vcombine.low %v222_v2, %v238_v3  ;;  %v4225_v16 = vcombine.low %v223_v4, %v239_v5  ;;  %v4416_v2 = vcombine.high %v414_v50, %v430_v51  ;;  %v446_v5 = vld [vmem:[#allocation5 + $0x870] sm:$0xff] }
 0x200   : > { %v4258_v18 = vcombine.high %v255_v13, %v271_v14 }
 0x202   : > { %3768 = vmatpush1.bf16.msra.mxu0 %v4507_v21  ;;  %3809 = vmatpush1.bf16.msra.mxu1 %v4509_v22  ;;  %v287_v21 = vld [vmem:[#allocation5 + $0x378] sm:$0xff] }
 0x203   : > { %3769 = vmatprep.subr.bf16.mxu0 %v4540_v53  ;;  %3810 = vmatprep.subr.bf16.mxu1 %v4542_v23  ;;  %v303_v22 = vld [vmem:[#allocation5 + $0x3f8] sm:$0xff]  ;;  %v4255_v53 = vcombine.low %v254_v10, %v270_v11  ;;  %v4257_v23 = vcombine.low %v255_v13, %v271_v14  ;;  %v478_v14 = vld [vmem:[#allocation5 + $0x970] sm:$0xff] }
 0x204   : > { %v4290_v25 = vcombine.high %v287_v21, %v303_v22 }
 0x206   : > { %3770 = vmatpush1.bf16.msra.mxu0 %v4539_v28  ;;  %3811 = vmatpush1.bf16.msra.mxu1 %v4541_v29  ;;  %v319_v28 = vld [vmem:[#allocation5 + $0x478] sm:$0xff] }
 0x207   : > { %3771 = vmatprep.subr.bf16.mxu0 %v4572_v30  ;;  %3812 = vmatprep.subr.bf16.mxu1 %v4574_v31  ;;  %v335_v29 = vld [vmem:[#allocation5 + $0x4f8] sm:$0xff]  ;;  %v4287_v30 = vcombine.low %v286_v19, %v302_v20  ;;  %v4289_v31 = vcombine.low %v287_v21, %v303_v22  ;;  %v510_v22 = vld [vmem:[#allocation5 + $0xa70] sm:$0xff] }
 0x20a   : > { %3772 = vmatpush1.bf16.msra.mxu0 %v4571_v36  ;;  %3813 = vmatpush1.bf16.msra.mxu1 %v4573_v37  ;;  %v367_v36 = vld [vmem:[#allocation5 + $0x5f8] sm:$0xff]  ;;  %v4319_v37 = vcombine.low %v318_v26, %v334_v27 }
 0x20b   : > { %3773 = vmatprep.subr.bf16.mxu0 %v4604_v38  ;;  %3814 = vmatprep.subr.bf16.mxu1 %v4606_v39  ;;  %v4321_v38 = vcombine.low %v319_v28, %v335_v29  ;;  %v4352_v39 = vcombine.high %v350_v33, %v366_v34  ;;  %v4354_v40 = vcombine.high %v351_v35, %v367_v36 }
 0x20e   : > { %3774 = vmatpush1.bf16.msra.mxu0 %v4603_v44  ;;  %3815 = vmatpush1.bf16.msra.mxu1 %v4605_v45  ;;  %v399_v44 = vld [vmem:[#allocation5 + $0x6f8] sm:$0xff]  ;;  %v4351_v45 = vcombine.low %v350_v33, %v366_v34 }
 0x20f   : > { %3775 = vmatprep.subr.bf16.mxu0 %v4636_v46  ;;  %3816 = vmatprep.subr.bf16.mxu1 %v4638_v47  ;;  %v4353_v46 = vcombine.low %v351_v35, %v367_v36  ;;  %v4384_v47 = vcombine.high %v382_v41, %v398_v42  ;;  %v4386_v49 = vcombine.high %v383_v43, %v399_v44  ;;  %v574_v36 = vld [vmem:[#allocation5 + $0xc70] sm:$0xff] }
 0x212   : > { %3776 = vmatpush1.bf16.msra.mxu0 %v4635_v52  ;;  %3817 = vmatpush1.bf16.msra.mxu1 %v4637_v54 }
 0x213   : > { %3777 = vmatprep.subr.bf16.mxu0 %v4668_v55  ;;  %3818 = vmatprep.subr.bf16.mxu1 %v4670_v56  ;;  %v415_v55 = vld [vmem:[#allocation5 + $0x778] sm:$0xff] }
 0x214   : > { %v431_v56 = vld [vmem:[#allocation5 + $0x7f8] sm:$0xff] }
 0x215   : > { %v4418_v4 = vcombine.high %v415_v55, %v431_v56  ;;  %v4417_v10 = vcombine.low %v415_v55, %v431_v56  ;;  %v639_v55 = vld [vmem:[#allocation5 + $0xe78] sm:$0xff] }
 0x216   : > { %3778 = vmatpush1.bf16.msra.mxu0 %v4667_v62  ;;  %3819 = vmatpush1.bf16.msra.mxu1 %v4669_v63  ;;  %v655_v56 = vld [vmem:[#allocation5 + $0xef8] sm:$0xff] }
 0x217   : > { %3829 = vmatprep.subr.bf16.mxu0 %v4192_v0  ;;  %3870 = vmatprep.subr.bf16.mxu1 %v4194_v1  ;;  %v4385_v1 = vcombine.low %v383_v43, %v399_v44  ;;  %v606_v44 = vld [vmem:[#allocation5 + $0xd70] sm:$0xff] }
 0x219   : > { %3780 = vmatmul.mubr.bf16.vlgmr.msra.gmra.mrb[24].mxu0 %v5086_v12  ;;  %3821 = vmatmul.mubr.bf16.vlgmr.msra.gmra.mrb[24].mxu1 %v5086_v12 }
 0x21a   : > { %3830 = vmatpush1.bf16.msra.mxu0 %v4191_v6  ;;  %3871 = vmatpush1.bf16.msra.mxu1 %v4193_v7  ;;  %v462_v6 = vld [vmem:[#allocation5 + $0x8f0] sm:$0xff]  ;;  %v447_v7 = vld [vmem:[#allocation5 + $0x878] sm:$0xff] }
 0x21b   : > { %3831 = vmatprep.subr.bf16.mxu0 %v4224_v8  ;;  %3872 = vmatprep.subr.bf16.mxu1 %v4226_v9  ;;  %v463_v8 = vld [vmem:[#allocation5 + $0x8f8] sm:$0xff]  ;;  %v4415_v9 = vcombine.low %v414_v50, %v430_v51  ;;  %v4448_v11 = vcombine.high %v446_v5, %v462_v6 }
 0x21c   : > { %3861 = vmatprep.mubr.bf16.mxu0 %v5080_v57  ;;  %3902 = vmatprep.mubr.bf16.mxu1 %v5080_v57  ;;  %v4322_v57 = vcombine.high %v319_v28, %v335_v29  ;;  %v4450_v13 = vcombine.high %v447_v7, %v463_v8  ;;  %v4449_v19 = vcombine.low %v447_v7, %v463_v8  ;;  %v542_v29 = vld [vmem:[#allocation5 + $0xb70] sm:$0xff] }
 0x21e   : > { %3832 = vmatpush1.bf16.msra.mxu0 %v4223_v15  ;;  %3873 = vmatpush1.bf16.msra.mxu1 %v4225_v16  ;;  %v494_v15 = vld [vmem:[#allocation5 + $0x9f0] sm:$0xff]  ;;  %v479_v16 = vld [vmem:[#allocation5 + $0x978] sm:$0xff] }
 0x21f   : > { %3833 = vmatprep.subr.bf16.mxu0 %v4256_v17  ;;  %3874 = vmatprep.subr.bf16.mxu1 %v4258_v18  ;;  %v495_v17 = vld [vmem:[#allocation5 + $0x9f8] sm:$0xff]  ;;  %v4447_v18 = vcombine.low %v446_v5, %v462_v6  ;;  %v4480_v20 = vcombine.high %v478_v14, %v494_v15 }
 0x220   : > { %v4482_v21 = vcombine.high %v479_v16, %v495_v17  ;;  %v4481_v26 = vcombine.low %v479_v16, %v495_v17 }
 0x222   : > { %3834 = vmatpush1.bf16.msra.mxu0 %v4255_v53  ;;  %3875 = vmatpush1.bf16.msra.mxu1 %v4257_v23  ;;  %v526_v53 = vld [vmem:[#allocation5 + $0xaf0] sm:$0xff]  ;;  %v511_v23 = vld [vmem:[#allocation5 + $0xa78] sm:$0xff] }
 0x223   : > { %3835 = vmatprep.subr.bf16.mxu0 %v4288_v24  ;;  %3876 = vmatprep.subr.bf16.mxu1 %v4290_v25  ;;  %v527_v24 = vld [vmem:[#allocation5 + $0xaf8] sm:$0xff]  ;;  %v4479_v25 = vcombine.low %v478_v14, %v494_v15  ;;  %v4512_v27 = vcombine.high %v510_v22, %v526_v53 }
 0x224   : > { %v4514_v28 = vcombine.high %v511_v23, %v527_v24  ;;  %v4513_v33 = vcombine.low %v511_v23, %v527_v24 }
 0x226   : > { %3836 = vmatpush1.bf16.msra.mxu0 %v4287_v30  ;;  %3877 = vmatpush1.bf16.msra.mxu1 %v4289_v31  ;;  %v558_v30 = vld [vmem:[#allocation5 + $0xbf0] sm:$0xff]  ;;  %v543_v31 = vld [vmem:[#allocation5 + $0xb78] sm:$0xff] }
 0x227   : > { %3837 = vmatprep.subr.bf16.mxu0 %v4320_v32  ;;  %3878 = vmatprep.subr.bf16.mxu1 %v4322_v57  ;;  %v559_v32 = vld [vmem:[#allocation5 + $0xbf8] sm:$0xff]  ;;  %v4511_v57 = vcombine.low %v510_v22, %v526_v53  ;;  %v4544_v34 = vcombine.high %v542_v29, %v558_v30 }
 0x228   : > { %v4546_v35 = vcombine.high %v543_v31, %v559_v32  ;;  %v4545_v41 = vcombine.low %v543_v31, %v559_v32 }
 0x22a   : > { %3838 = vmatpush1.bf16.msra.mxu0 %v4319_v37  ;;  %3879 = vmatpush1.bf16.msra.mxu1 %v4321_v38  ;;  %v590_v37 = vld [vmem:[#allocation5 + $0xcf0] sm:$0xff]  ;;  %v575_v38 = vld [vmem:[#allocation5 + $0xc78] sm:$0xff] }
 0x22b   : > { %3839 = vmatprep.subr.bf16.mxu0 %v4352_v39  ;;  %3880 = vmatprep.subr.bf16.mxu1 %v4354_v40  ;;  %v591_v39 = vld [vmem:[#allocation5 + $0xcf8] sm:$0xff]  ;;  %v4543_v40 = vcombine.low %v542_v29, %v558_v30  ;;  %v4576_v42 = vcombine.high %v574_v36, %v590_v37 }
 0x22c   : > { %v3535_v48 = vpop.f32.mrb[12].mxu0  ;;  %v3576_v52 = vpop.f32.mrb[12].mxu1  ;;  %v4578_v43 = vcombine.high %v575_v38, %v591_v39 }
 0x22d   : > { %v3537_v54 = vpop.f32.mrb[13].mxu0  ;;  %v3578_v59 = vpop.f32.mrb[13].mxu1 }
 0x22e   : > { %v4703_v58 = vpack.c.bf16 %v3537_v54, %v3535_v48  ;;  %v3539_v60 = vpop.f32.mrb[14].mxu0  ;;  %3840 = vmatpush1.bf16.msra.mxu0 %v4351_v45  ;;  %v4704_v62 = vpack.c.bf16 %v3578_v59, %v3576_v52  ;;  %v3580_v63 = vpop.f32.mrb[14].mxu1  ;;  %3881 = vmatpush1.bf16.msra.mxu1 %v4353_v46  ;;  %v622_v45 = vld [vmem:[#allocation5 + $0xdf0] sm:$0xff]  ;;  %v607_v46 = vld [vmem:[#allocation5 + $0xd78] sm:$0xff]  ;;  %v4575_v48 = vcombine.low %v574_v36, %v590_v37 }
 0x22f   : > { %v3540_v0 = vpop.f32.mrb[15].mxu0  ;;  %3841 = vmatprep.subr.bf16.mxu0 %v4384_v47  ;;  %v3581_v3 = vpop.f32.mrb[15].mxu1  ;;  %3882 = vmatprep.subr.bf16.mxu1 %v4386_v49  ;;  %v623_v47 = vld [vmem:[#allocation5 + $0xdf8] sm:$0xff]  ;;  %v4577_v49 = vcombine.low %v575_v38, %v591_v39  ;;  %v4608_v50 = vcombine.high %v606_v44, %v622_v45  ;;  %v638_v52 = vld [vmem:[#allocation5 + $0xe70] sm:$0xff] }
 0x230   : > { %4045 = vst [vmem:[%s5105_s17 + $0x30] sm:$0xff] %v4703_v58  ;;  %4046 = vst [vmem:[%s5105_s17 + $0x38] sm:$0xff] %v4704_v62  ;;  %v4610_v51 = vcombine.high %v607_v46, %v623_v47  ;;  %v654_v54 = vld [vmem:[#allocation5 + $0xef0] sm:$0xff]  ;;  %v4607_v58 = vcombine.low %v606_v44, %v622_v45  ;;  %v4609_v59 = vcombine.low %v607_v46, %v623_v47  ;;  %v671_v0 = vld [vmem:[#allocation5 + $0xf78] sm:$0xff] }
 0x231   : > { %v4640_v60 = vcombine.high %v638_v52, %v654_v54  ;;  %v670_v62 = vld [vmem:[#allocation5 + $0xf70] sm:$0xff]  ;;  %v4641_v3 = vcombine.low %v639_v55, %v655_v56 }
 0x232   : > { %3842 = vmatpush1.bf16.msra.mxu0 %v4383_v61  ;;  %3883 = vmatpush1.bf16.msra.mxu1 %v4385_v1  ;;  %v4642_v61 = vcombine.high %v639_v55, %v655_v56  ;;  %v686_v63 = vld [vmem:[#allocation5 + $0xff0] sm:$0xff]  ;;  %v687_v1 = vld [vmem:[#allocation5 + $0xff8] sm:$0xff] }
 0x233   : > { %3843 = vmatprep.subr.bf16.mxu0 %v4416_v2  ;;  %3884 = vmatprep.subr.bf16.mxu1 %v4418_v4  ;;  %v4639_v2 = vcombine.low %v638_v52, %v654_v54  ;;  %v4672_v4 = vcombine.high %v670_v62, %v686_v63  ;;  %v4674_v5 = vcombine.high %v671_v0, %v687_v1 }
 0x234   : > { %v4671_v6 = vcombine.low %v670_v62, %v686_v63  ;;  %v4673_v7 = vcombine.low %v671_v0, %v687_v1 }
 0x236   : > { %3844 = vmatpush1.bf16.msra.mxu0 %v4415_v9  ;;  %3885 = vmatpush1.bf16.msra.mxu1 %v4417_v10 }
 0x237   : > { %3845 = vmatprep.subr.bf16.mxu0 %v4448_v11  ;;  %3886 = vmatprep.subr.bf16.mxu1 %v4450_v13 }
 0x23a   : > { %3846 = vmatpush1.bf16.msra.mxu0 %v4447_v18  ;;  %3887 = vmatpush1.bf16.msra.mxu1 %v4449_v19 }
 0x23b   : > { %3847 = vmatprep.subr.bf16.mxu0 %v4480_v20  ;;  %3888 = vmatprep.subr.bf16.mxu1 %v4482_v21 }
 0x23e   : > { %3848 = vmatpush1.bf16.msra.mxu0 %v4479_v25  ;;  %3889 = vmatpush1.bf16.msra.mxu1 %v4481_v26 }
 0x23f   : > { %3849 = vmatprep.subr.bf16.mxu0 %v4512_v27  ;;  %3890 = vmatprep.subr.bf16.mxu1 %v4514_v28 }
 0x242   : > { %3850 = vmatpush1.bf16.msra.mxu0 %v4511_v57  ;;  %3891 = vmatpush1.bf16.msra.mxu1 %v4513_v33 }
 0x243   : > { %3851 = vmatprep.subr.bf16.mxu0 %v4544_v34  ;;  %3892 = vmatprep.subr.bf16.mxu1 %v4546_v35 }
 0x246   : > { %3852 = vmatpush1.bf16.msra.mxu0 %v4543_v40  ;;  %3893 = vmatpush1.bf16.msra.mxu1 %v4545_v41 }
 0x247   : > { %3853 = vmatprep.subr.bf16.mxu0 %v4576_v42  ;;  %3894 = vmatprep.subr.bf16.mxu1 %v4578_v43 }
 0x24a   : > { %3854 = vmatpush1.bf16.msra.mxu0 %v4575_v48  ;;  %3895 = vmatpush1.bf16.msra.mxu1 %v4577_v49 }
 0x24b   : > { %3855 = vmatprep.subr.bf16.mxu0 %v4608_v50  ;;  %3896 = vmatprep.subr.bf16.mxu1 %v4610_v51 }
 0x24e   : > { %3856 = vmatpush1.bf16.msra.mxu0 %v4607_v58  ;;  %3897 = vmatpush1.bf16.msra.mxu1 %v4609_v59 }
 0x24f   : > { %3857 = vmatprep.subr.bf16.mxu0 %v4640_v60  ;;  %3898 = vmatprep.subr.bf16.mxu1 %v4642_v61 }
 0x252   : > { %3858 = vmatpush1.bf16.msra.mxu0 %v4639_v2  ;;  %3899 = vmatpush1.bf16.msra.mxu1 %v4641_v3 }
 0x253   : > { %3859 = vmatprep.subr.bf16.mxu0 %v4672_v4  ;;  %3900 = vmatprep.subr.bf16.mxu1 %v4674_v5 }
 0x256   : > { %3860 = vmatpush1.bf16.msra.mxu0 %v4671_v6  ;;  %3901 = vmatpush1.bf16.msra.mxu1 %v4673_v7 }
 0x259   : > { %3862 = vmatmul.mubr.bf16.vlgmr.msra.gmra.mrb[28].mxu0 %v5086_v12  ;;  %3903 = vmatmul.mubr.bf16.vlgmr.msra.gmra.mrb[28].mxu1 %v5086_v12 }
 0x26c   : > { %v3617_v8 = vpop.f32.mrb[16].mxu0  ;;  %v3658_v9 = vpop.f32.mrb[16].mxu1 }
 0x26d   : > { %v3619_v10 = vpop.f32.mrb[17].mxu0  ;;  %v3660_v13 = vpop.f32.mrb[17].mxu1 }
 0x26e   : > { %v4705_v11 = vpack.c.bf16 %v3619_v10, %v3617_v8  ;;  %v3621_v14 = vpop.f32.mrb[18].mxu0  ;;  %v4706_v15 = vpack.c.bf16 %v3660_v13, %v3658_v9  ;;  %v3662_v16 = vpop.f32.mrb[18].mxu1 }
 0x26f   : > { %v3622_v17 = vpop.f32.mrb[19].mxu0  ;;  %v3663_v18 = vpop.f32.mrb[19].mxu1 }
 0x270   : > { %4047 = vst [vmem:[%s5105_s17 + $0x40] sm:$0xff] %v4705_v11  ;;  %4048 = vst [vmem:[%s5105_s17 + $0x48] sm:$0xff] %v4706_v15 }
 0x2ac   : > { %v3699_v19 = vpop.f32.mrb[20].mxu0  ;;  %v3740_v20 = vpop.f32.mrb[20].mxu1 }
 0x2ad   : > { %v3701_v21 = vpop.f32.mrb[21].mxu0  ;;  %v3742_v53 = vpop.f32.mrb[21].mxu1 }
 0x2ae   : > { %v4707_v22 = vpack.c.bf16 %v3701_v21, %v3699_v19  ;;  %v3703_v12 = vpop.f32.mrb[22].mxu0  ;;  %v4708_v23 = vpack.c.bf16 %v3742_v53, %v3740_v20  ;;  %v3744_v24 = vpop.f32.mrb[22].mxu1 }
 0x2af   : > { %v3704_v25 = vpop.f32.mrb[23].mxu0  ;;  %v3745_v26 = vpop.f32.mrb[23].mxu1 }
 0x2b0   : > { %4049 = vst [vmem:[%s5105_s17 + $0x50] sm:$0xff] %v4707_v22  ;;  %4050 = vst [vmem:[%s5105_s17 + $0x58] sm:$0xff] %v4708_v23 }
 0x2ec   : > { %v3781_v27 = vpop.f32.mrb[24].mxu0  ;;  %v3822_v28 = vpop.f32.mrb[24].mxu1 }
 0x2ed   : > { %v3783_v29 = vpop.f32.mrb[25].mxu0  ;;  %v3824_v31 = vpop.f32.mrb[25].mxu1 }
 0x2ee   : > { %v4709_v30 = vpack.c.bf16 %v3783_v29, %v3781_v27  ;;  %v3785_v32 = vpop.f32.mrb[26].mxu0  ;;  %v4710_v57 = vpack.c.bf16 %v3824_v31, %v3822_v28  ;;  %v3826_v33 = vpop.f32.mrb[26].mxu1 }
 0x2ef   : > { %v3786_v34 = vpop.f32.mrb[27].mxu0  ;;  %v3827_v35 = vpop.f32.mrb[27].mxu1 }
 0x2f0   : > { %4051 = vst [vmem:[%s5105_s17 + $0x60] sm:$0xff] %v4709_v30  ;;  %4052 = vst [vmem:[%s5105_s17 + $0x68] sm:$0xff] %v4710_v57 }
 0x32c   : > { %v3863_v36 = vpop.f32.mrb[28].mxu0  ;;  %v3904_v37 = vpop.f32.mrb[28].mxu1 }
 0x32d   : > { %v3865_v38 = vpop.f32.mrb[29].mxu0  ;;  %v3906_v40 = vpop.f32.mrb[29].mxu1 }
 0x32e   : > { %v4711_v39 = vpack.c.bf16 %v3865_v38, %v3863_v36  ;;  %v3867_v41 = vpop.f32.mrb[30].mxu0  ;;  %v4712_v42 = vpack.c.bf16 %v3906_v40, %v3904_v37  ;;  %v3908_v43 = vpop.f32.mrb[30].mxu1 }
 0x32f   : > { %v3868_v44 = vpop.f32.mrb[31].mxu0  ;;  %v3909_v45 = vpop.f32.mrb[31].mxu1 }
 0x330   : > { %4053 = vst [vmem:[%s5105_s17 + $0x70] sm:$0xff] %v4711_v39  ;;  %4054 = vst [vmem:[%s5105_s17 + $0x78] sm:$0xff] %v4712_v42 }
 0x331   : > { %4846 = shalt.err (!%p4843_p7)
}
 0x332   : > { %s4847_s7 = scalar_lea.hbm %s5140_s30, 2048  ;;  %s4851_s25 = scalar_lea.hbm %s5188_s2, 4096 }
 0x333   : > { %p4848_p9 = scmp.ne.s32.totalorder %s5140_s30, %s4847_s7  ;;  %p4852_p0 = scmp.lt.u32.totalorder %s5140_s30, %s5188_s2 }
 0x334   : > { %p4853_p11 = scmp.lt.u32.totalorder %s4851_s25, %s4847_s7  ;;  %p4855_p4 = scmp.lt.u32.totalorder %s4847_s7, %s5140_s30 }
 0x335   : > { %p4849_p2 = pnand %p4848_p9, %p5016_p12 }
 0x336   : > { %p4854_p1 = por %p4853_p11, %p4852_p0 }
 0x337   : > { %p4850_p5 = pneg %p4849_p2 }
 0x338   : > { %p4856_p6 = por %p4855_p4, %p4854_p1 }
 0x33a   : > { %p4857_p8 = pnand %p4856_p6, %p4850_p5 }
 0x33c   : > { %4860 = shalt.err (!%p4857_p8)
}
 0x33d   : > { %4720 = dma.vmem_to_hbm [thread:$0]  (%p5016_p12), %s5142_s22, 2048, %s5140_s30, %s4056_s13  }
 0x33e PF: > { %s4082_s19 = sand.u32 1, %s4891_s9   ;;  %p5203_p10 = scmp.ne.s32.totalorder %s5193_s16, 0 }
 0x33f   : > { %p5204_p13 = scmp.ge.s32.totalorder %s4903_s12, 2  ;;  %s4083_s29 = scalar_lea.sflag [#allocation4], %s4082_s19 }
 0x341   : > { %p4731_p3 = pnand %p5204_p13, %p5203_p10 }
 0x343   : > { %4886 = dma.done.wait (!%p4731_p3), %s4083_s29, 2048  }
 0x344   : > { %4888 = vsyncadd (!%p4731_p3), %s4083_s29, 4294965248  ;;  %p16_p7 = scmp.ge.s32.totalorder %s4981_s21, 4   ;;  %s5205_s9 = smov %s4895_s10 }
 0x345   : > { %s5206_s10 = smov %s4899_s11  ;;  %s5207_s11 = smov %s5012_s8 }
 0x346   : > { %s5208_s12 = smov %s4981_s21  ;;  %18 = sbr.rel (!%p16_p7) target bundleno = 6 (0x6), region = 77 }
 0x34d   :  { %4088 = vsyncpa [#allocation3], 1 }
 0x34e   :  { %4090 = vsyncpa [#allocation3 + $0x1], 1 }
 0x34f   :  { %4091 = vsyncpa [#allocation6], 1 }
 0x350   :  { %4092 = vsyncpa [#allocation4], 1 }
 0x351   :  { %4094 = vsyncpa [#allocation4 + $0x1], 1 }

</bundles_post_ra>
